<compile_context>
chip_gen: v7x
topology: tpu7x:2x2x1
jax: 0.10.0
libtpu: 0.0.40
codegen_flags: <defaults>
</compile_context>

<pallas_src>
import functools
import math

import jax
import jax.numpy as jnp
from jax.experimental import pallas as pl
from jax.experimental.pallas import tpu as pltpu


# ----------------------------------------------------------------------------
# Fused forward kernel: one grid step per batch element.
# ----------------------------------------------------------------------------
def _fused_forward_kernel(
    x_emb_ref,    # (1, C, D)        this batch element's embedding view of X
    x_v_ref,      # (1, S, C, F)     this batch element's X (for the value projection)
    scores_ref,   # (S, C, C)        summed connection scores (batch independent)
    wvT_ref,      # (F, F)           wV.T
    in_wT_ref,    # (NL, D, 3D)      in_proj_weight.T, Q columns pre-scaled by 1/sqrt(hd)
    in_b_ref,     # (NL, 3D)
    out_wT_ref,   # (NL, D, D)
    out_b_ref,    # (NL, D)
    w1T_ref,      # (NL, D, 4D)
    b1_ref,       # (NL, 4D)
    w2T_ref,      # (NL, 4D, D)
    b2_ref,       # (NL, D)
    n1w_ref, n1b_ref, n2w_ref, n2b_ref,   # (NL, D) each
    fc_wT_ref,    # (D, c*f)
    fc_b_ref,     # (1, c*f)
    out_ref,      # (1, 1, c*f)
    *, S, C, F, H, NL, eps=1e-5,
):
    D = S * F
    hd = D // H   # == F for this config

    def softmax_last(sc):
        sc = sc - jnp.max(sc, axis=-1, keepdims=True)
        e = jnp.exp(sc)
        return e * pl.reciprocal(jnp.sum(e, axis=-1, keepdims=True), approx=True)

    def layer_norm(t, w, b):
        mu = jnp.mean(t, axis=-1, keepdims=True)
        var = jnp.mean((t - mu) ** 2, axis=-1, keepdims=True)
        return (t - mu) * jax.lax.rsqrt(var + eps) * w + b

    # ---- InputAttentionLayer fused with the embedding average ----
    # NOTE: the attention weights are batch-independent by design (softmax over the
    # connection scores only) -- this matches the original PyTorch module.
    xv = x_v_ref[0]                                               # (S, C, F)
    v = jnp.dot(xv.reshape(S * C, F), wvT_ref[...],
                preferred_element_type=jnp.float32).reshape(S, C, F)
    w_attn = softmax_last(scores_ref[...])                        # (S, C, C)
    attn = jnp.einsum("sqk,skf->sqf", w_attn, v,
                      preferred_element_type=jnp.float32)         # (S, C, F)
    attn = jnp.transpose(attn, (1, 0, 2)).reshape(C, D)           # (C, S*F) = (C, D)
    x = (x_emb_ref[0] + attn) * 0.5                               # (C, D)

    # ---- TransformerEncoder: post-norm, relu, eval-mode dropout ----
    for l in range(NL):  # static unroll over layers; weights indexed statically
        qkv = (jnp.dot(x, in_wT_ref[l], preferred_element_type=jnp.float32)
               + in_b_ref[l:l + 1])                               # (C, 3D), Q pre-scaled
        q = jnp.transpose(qkv[:, 0:D].reshape(C, H, hd), (1, 0, 2))        # (H, C, hd)
        k = jnp.transpose(qkv[:, D:2 * D].reshape(C, H, hd), (1, 0, 2))
        vv = jnp.transpose(qkv[:, 2 * D:3 * D].reshape(C, H, hd), (1, 0, 2))

        sc = jnp.einsum("hqd,hkd->hqk", q, k,
                        preferred_element_type=jnp.float32)       # (H, C, C)
        p = softmax_last(sc)
        ao = jnp.einsum("hqk,hkd->hqd", p, vv,
                        preferred_element_type=jnp.float32)       # (H, C, hd)
        ao = jnp.transpose(ao, (1, 0, 2)).reshape(C, D)
        ao = (jnp.dot(ao, out_wT_ref[l], preferred_element_type=jnp.float32)
              + out_b_ref[l:l + 1])

        x = layer_norm(x + ao, n1w_ref[l:l + 1], n1b_ref[l:l + 1])

        h1 = jnp.maximum(
            jnp.dot(x, w1T_ref[l], preferred_element_type=jnp.float32) + b1_ref[l:l + 1],
            0.0)
        h2 = (jnp.dot(h1, w2T_ref[l], preferred_element_type=jnp.float32)
              + b2_ref[l:l + 1])
        x = layer_norm(x + h2, n2w_ref[l:l + 1], n2b_ref[l:l + 1])

    # ---- final fc on the last token (transformerOutputLayerUseEveryColumn=False) ----
    final = x[C - 1:C, :]                                         # (1, D)
    logits = (jnp.dot(final, fc_wT_ref[...], preferred_element_type=jnp.float32)
              + fc_b_ref[...])                                    # (1, c*f) lane-dense
    out_ref[0] = logits


# ----------------------------------------------------------------------------
# Wrapper: layout plumbing + one pallas_call over the batch grid.
# ----------------------------------------------------------------------------
def custom_transformer_forward(prep, X, dbConn, *, s, c, f, numLayers):
    B = X.shape[0]
    D = s * f

    # TODO(synk): the original module's databaseFeatureConnections is a sparse tensor
    # with .to_dense(); there is no Pallas sparse equivalent, so a dense tensor is
    # reduced here on the XLA side (static per forward).
    scores = jnp.sum(dbConn, axis=(2, 4))                          # (s, c, c)

    # X.permute(2,0,1,3).view(c,B,s*f) laid out per batch element: (B, c, s*f).
    x_emb = jnp.transpose(X, (0, 2, 1, 3)).reshape(B, c, D)

    kernel = functools.partial(_fused_forward_kernel,
                               S=s, C=c, F=f, H=s, NL=numLayers)

    def full_spec(shape):
        nd = len(shape)
        return pl.BlockSpec(shape, lambda b, nd=nd: (0,) * nd)

    in_specs = [
        pl.BlockSpec((1, c, D), lambda b: (b, 0, 0)),              # x_emb (per batch)
        pl.BlockSpec((1, s, c, f), lambda b: (b, 0, 0, 0)),        # X     (per batch)
        full_spec((s, c, c)),                                      # scores
        full_spec((f, f)),                                         # wV.T
        full_spec((numLayers, D, 3 * D)),                          # in_wT
        full_spec((numLayers, 3 * D)),                             # in_b
        full_spec((numLayers, D, D)),                              # out_wT
        full_spec((numLayers, D)),                                 # out_b
        full_spec((numLayers, D, 4 * D)),                          # w1T
        full_spec((numLayers, 4 * D)),                             # b1
        full_spec((numLayers, 4 * D, D)),                          # w2T
        full_spec((numLayers, D)),                                 # b2
        full_spec((numLayers, D)),                                 # n1w
        full_spec((numLayers, D)),                                 # n1b
        full_spec((numLayers, D)),                                 # n2w
        full_spec((numLayers, D)),                                 # n2b
        full_spec((D, c * f)),                                     # fc_wT
        full_spec((1, c * f)),                                     # fc_b
    ]

    out = pl.pallas_call(
        kernel,
        out_shape=jax.ShapeDtypeStruct((B, 1, c * f), jnp.float32),
        grid=(B,),
        in_specs=in_specs,
        out_specs=pl.BlockSpec((1, 1, c * f), lambda b: (b, 0, 0)),
        compiler_params=pltpu.CompilerParams(dimension_semantics=("parallel",)),
    )(x_emb, X, scores,
      prep["wvT"], prep["in_wT"], prep["in_b"], prep["out_wT"], prep["out_b"],
      prep["w1T"], prep["b1"], prep["w2T"], prep["b2"],
      prep["n1w"], prep["n1b"], prep["n2w"], prep["n2b"],
      prep["fc_wT"], prep["fc_b"])

    return out.reshape(B, c, f)


# ----------------------------------------------------------------------------
# Parameter prep: pre-transpose, stack per-layer weights, fold the 1/sqrt(hd)
# attention scale into the Q part of in_proj.  Done once, outside the forward.
# ----------------------------------------------------------------------------
def prepare_params(params, *, s, c, f, numLayers):
    D = s * f
    hd = f
    scale = 1.0 / math.sqrt(hd)
    qscale = jnp.concatenate([jnp.full((D,), scale, jnp.float32),
                              jnp.ones((2 * D,), jnp.float32)])
    layers = params["layers"]
    stack = lambda name: jnp.stack([lp[name] for lp in layers])
    stackT = lambda name: jnp.stack([lp[name].T for lp in layers])
    return dict(
        wvT=params["wV"].T,
        in_wT=stackT("in_w") * qscale[None, None, :],
        in_b=stack("in_b") * qscale[None, :],
        out_wT=stackT("out_w"), out_b=stack("out_b"),
        w1T=stackT("w1"), b1=stack("b1"),
        w2T=stackT("w2"), b2=stack("b2"),
        n1w=stack("n1w"), n1b=stack("n1b"),
        n2w=stack("n2w"), n2b=stack("n2b"),
        fc_wT=params["fc_w"].T,
        fc_b=params["fc_b"].reshape(1, c * f),
    )


# ----------------------------------------------------------------------------
# Pure-JAX reference (same math, PyTorch-layout params) for a sanity check.
# ----------------------------------------------------------------------------
def forward_reference(params, X, dbConn, *, s, c, f):
    B = X.shape[0]
    D = s * f
    H = s
    hd = f

    emb = jnp.transpose(X, (2, 0, 1, 3)).reshape(c, B, D)
    v = jnp.einsum("bsci,oi->bsco", X, params["wV"])
    scores = jnp.sum(dbConn, axis=(2, 4))
    wts = jax.nn.softmax(scores, axis=-1)
    attn = jnp.einsum("sqk,bskf->bsqf", wts, v)
    attn = jnp.transpose(attn, (2, 0, 1, 3)).reshape(c, B, D)
    x = (emb + attn) / 2.0

    def ln(t, w, b):
        mu = jnp.mean(t, axis=-1, keepdims=True)
        var = jnp.mean((t - mu) ** 2, axis=-1, keepdims=True)
        return (t - mu) / jnp.sqrt(var + 1e-5) * w + b

    for lp in params["layers"]:
        qkv = jnp.einsum("lbd,ed->lbe", x, lp["in_w"]) + lp["in_b"]
        q, k, vv = qkv[..., :D], qkv[..., D:2 * D], qkv[..., 2 * D:]
        qh = q.reshape(c, B, H, hd)
        kh = k.reshape(c, B, H, hd)
        vh = vv.reshape(c, B, H, hd)
        sc = jnp.einsum("lbhd,mbhd->bhlm", qh, kh) / math.sqrt(hd)
        w = jax.nn.softmax(sc, axis=-1)
        ao = jnp.einsum("bhlm,mbhd->lbhd", w, vh).reshape(c, B, D)
        ao = jnp.einsum("lbd,ed->lbe", ao, lp["out_w"]) + lp["out_b"]
        x = ln(x + ao, lp["n1w"], lp["n1b"])
        h1 = jax.nn.relu(jnp.einsum("lbd,ed->lbe", x, lp["w1"]) + lp["b1"])
        h2 = jnp.einsum("lbe,de->lbd", h1, lp["w2"]) + lp["b2"]
        x = ln(x + h2, lp["n2w"], lp["n2b"])

    final = x[-1]
    logits = final @ params["fc_w"].T + params["fc_b"]
    return logits.reshape(B, c, f)


# ----------------------------------------------------------------------------
# Deterministic parameter init (shapes follow the PyTorch module __init__)
# ----------------------------------------------------------------------------
def init_params(key, *, s, c, f, numLayers):
    D = s * f
    fMlp = 4 * D

    def uni(k, shape, fan_in):
        bound = 1.0 / math.sqrt(fan_in)
        return jax.random.uniform(k, shape, jnp.float32, -bound, bound)

    keys = jax.random.split(key, 3 + numLayers)
    params = {
        "wV": uni(keys[0], (f, f), f),                 # InputAttentionLayer.wV
        "fc_w": uni(keys[1], (c * f, D), D),           # fc: (c*f, embeddingDim)
        "fc_b": uni(keys[2], (c * f,), D),
        "layers": [],
    }
    for i in range(numLayers):
        lk = jax.random.split(keys[3 + i], 8)
        params["layers"].append(dict(
            in_w=uni(lk[0], (3 * D, D), D), in_b=jnp.zeros((3 * D,), jnp.float32),
            out_w=uni(lk[1], (D, D), D), out_b=uni(lk[2], (D,), D),
            w1=uni(lk[3], (fMlp, D), D), b1=uni(lk[4], (fMlp,), D),
            w2=uni(lk[5], (D, fMlp), fMlp), b2=uni(lk[6], (D,), fMlp),
            n1w=jnp.ones((D,), jnp.float32), n1b=jnp.zeros((D,), jnp.float32),
            n2w=jnp.ones((D,), jnp.float32), n2b=jnp.zeros((D,), jnp.float32),
        ))
    return params


if __name__ == "__main__":
    p, s, c, f, numLayers = 2, 4, 8, 16, 2   # d_model = s*f = 64, nhead = s = 4, seq = c = 8
    B = 2

    key = jax.random.PRNGKey(0)
    kX, kC, kP = jax.random.split(key, 3)
    X = jax.random.normal(kX, (B, s, c, f), jnp.float32)
    # dense stand-in for the (sparse) databaseFeatureConnections tensor
    dbConn = jax.random.uniform(kC, (s, c, f, c, f), jnp.float32)
    params = init_params(kP, s=s, c=c, f=f, numLayers=numLayers)
    prep = prepare_params(params, s=s, c=c, f=f, numLayers=numLayers)

    fwd = jax.jit(functools.partial(custom_transformer_forward,
                                    s=s, c=c, f=f, numLayers=numLayers))
    logits = jax.block_until_ready(fwd(prep, X, dbConn))
    assert logits.shape == (B, c, f)

    ref = forward_reference(params, X, dbConn, s=s, c=c, f=f)
    err = float(jnp.max(jnp.abs(logits - ref)))
    assert err < 5e-2, f"mismatch vs reference: max abs err = {err}"

    print("KERNEL_OK")
</pallas_src>

<mosaic_0001>
module attributes {stable_mosaic.version = 11 : i64} {
  func.func @_fused_forward_kernel(%arg0: i32, %arg1: memref<1x8x64xf32, #tpu.memory_space<vmem>>, %arg2: memref<1x4x8x16xf32, #tpu.memory_space<vmem>>, %arg3: memref<4x8x8xf32, #tpu.memory_space<vmem>>, %arg4: memref<16x16xf32, #tpu.memory_space<vmem>>, %arg5: memref<2x64x192xf32, #tpu.memory_space<vmem>>, %arg6: memref<2x192xf32, #tpu.memory_space<vmem>>, %arg7: memref<2x64x64xf32, #tpu.memory_space<vmem>>, %arg8: memref<2x64xf32, #tpu.memory_space<vmem>>, %arg9: memref<2x64x256xf32, #tpu.memory_space<vmem>>, %arg10: memref<2x256xf32, #tpu.memory_space<vmem>>, %arg11: memref<2x256x64xf32, #tpu.memory_space<vmem>>, %arg12: memref<2x64xf32, #tpu.memory_space<vmem>>, %arg13: memref<2x64xf32, #tpu.memory_space<vmem>>, %arg14: memref<2x64xf32, #tpu.memory_space<vmem>>, %arg15: memref<2x64xf32, #tpu.memory_space<vmem>>, %arg16: memref<2x64xf32, #tpu.memory_space<vmem>>, %arg17: memref<64x128xf32, #tpu.memory_space<vmem>>, %arg18: memref<1x128xf32, #tpu.memory_space<vmem>>, %arg19: memref<1x1x128xf32, #tpu.memory_space<vmem>>) attributes {dimension_semantics = [#tpu.dimension_semantics<parallel>], iteration_bounds = array<i64: 2>, scalar_prefetch = 0 : i64, scratch_operands = 0 : i64, tpu.core_type = #tpu.core_type<tc>, window_params = [{transform_indices = @transform_0, window_bounds = array<i64: 1, 8, 64>}, {transform_indices = @transform_1, window_bounds = array<i64: 1, 4, 8, 16>}, {pipeline_mode = #tpu.pipeline_mode<synchronous>, transform_indices = @transform_2, window_bounds = array<i64: 4, 8, 8>}, {pipeline_mode = #tpu.pipeline_mode<synchronous>, transform_indices = @transform_3, window_bounds = array<i64: 16, 16>}, {pipeline_mode = #tpu.pipeline_mode<synchronous>, transform_indices = @transform_4, window_bounds = array<i64: 2, 64, 192>}, {pipeline_mode = #tpu.pipeline_mode<synchronous>, transform_indices = @transform_5, window_bounds = array<i64: 2, 192>}, {pipeline_mode = #tpu.pipeline_mode<synchronous>, transform_indices = @transform_6, window_bounds = array<i64: 2, 64, 64>}, {pipeline_mode = #tpu.pipeline_mode<synchronous>, transform_indices = @transform_7, window_bounds = array<i64: 2, 64>}, {pipeline_mode = #tpu.pipeline_mode<synchronous>, transform_indices = @transform_8, window_bounds = array<i64: 2, 64, 256>}, {pipeline_mode = #tpu.pipeline_mode<synchronous>, transform_indices = @transform_9, window_bounds = array<i64: 2, 256>}, {pipeline_mode = #tpu.pipeline_mode<synchronous>, transform_indices = @transform_10, window_bounds = array<i64: 2, 256, 64>}, {pipeline_mode = #tpu.pipeline_mode<synchronous>, transform_indices = @transform_11, window_bounds = array<i64: 2, 64>}, {pipeline_mode = #tpu.pipeline_mode<synchronous>, transform_indices = @transform_12, window_bounds = array<i64: 2, 64>}, {pipeline_mode = #tpu.pipeline_mode<synchronous>, transform_indices = @transform_13, window_bounds = array<i64: 2, 64>}, {pipeline_mode = #tpu.pipeline_mode<synchronous>, transform_indices = @transform_14, window_bounds = array<i64: 2, 64>}, {pipeline_mode = #tpu.pipeline_mode<synchronous>, transform_indices = @transform_15, window_bounds = array<i64: 2, 64>}, {pipeline_mode = #tpu.pipeline_mode<synchronous>, transform_indices = @transform_16, window_bounds = array<i64: 64, 128>}, {pipeline_mode = #tpu.pipeline_mode<synchronous>, transform_indices = @transform_17, window_bounds = array<i64: 1, 128>}, {transform_indices = @transform_18, window_bounds = array<i64: 1, 1, 128>}]} {
    %c0 = arith.constant 0 : index
    %c0_0 = arith.constant 0 : index
    %c0_1 = arith.constant 0 : index
    %c0_2 = arith.constant 0 : index
    %0 = vector.load %arg2[%c0, %c0_0, %c0_1, %c0_2] : memref<1x4x8x16xf32, #tpu.memory_space<vmem>>, vector<1x4x8x16xf32>
    %1 = vector.shape_cast %0 : vector<1x4x8x16xf32> to vector<4x8x16xf32>
    %2 = vector.shape_cast %1 : vector<4x8x16xf32> to vector<32x16xf32>
    %c0_3 = arith.constant 0 : index
    %c0_4 = arith.constant 0 : index
    %3 = vector.load %arg4[%c0_3, %c0_4] : memref<16x16xf32, #tpu.memory_space<vmem>>, vector<16x16xf32>
    %cst = arith.constant dense<0.000000e+00> : vector<32x16xf32>
    %4 = tpu.matmul %2, %3, %cst {dimension_numbers = #tpu.dot_dimension_numbers<[1], [0], [0], [1], [0, 0, 1, 1], [], []>} : vector<32x16xf32>, vector<16x16xf32>, vector<32x16xf32> -> vector<32x16xf32>
    %5 = vector.shape_cast %4 : vector<32x16xf32> to vector<4x8x16xf32>
    %c0_5 = arith.constant 0 : index
    %c0_6 = arith.constant 0 : index
    %c0_7 = arith.constant 0 : index
    %6 = vector.load %arg3[%c0_5, %c0_6, %c0_7] : memref<4x8x8xf32, #tpu.memory_space<vmem>>, vector<4x8x8xf32>
    %cst_8 = arith.constant dense<0xFF800000> : vector<4x8xf32>
    %7 = vector.multi_reduction <maximumf>, %6, %cst_8 [2] : vector<4x8x8xf32> to vector<4x8xf32>
    %8 = vector.shape_cast %7 : vector<4x8xf32> to vector<4x8x1xf32>
    %9 = vector.broadcast %8 : vector<4x8x1xf32> to vector<4x8x8xf32>
    %10 = arith.subf %6, %9 : vector<4x8x8xf32>
    %11 = math.exp %10 : vector<4x8x8xf32>
    %cst_9 = arith.constant dense<0.000000e+00> : vector<4x8xf32>
    %12 = vector.multi_reduction <add>, %11, %cst_9 [2] : vector<4x8x8xf32> to vector<4x8xf32>
    %13 = vector.shape_cast %12 : vector<4x8xf32> to vector<4x8x1xf32>
    %14 = tpu.reciprocal %13 {approx = true} : vector<4x8x1xf32> -> vector<4x8x1xf32>
    %15 = vector.broadcast %14 : vector<4x8x1xf32> to vector<4x8x8xf32>
    %16 = arith.mulf %11, %15 : vector<4x8x8xf32>
    "tpu.trace_start"() <{level = 10 : i32, message = "sqk,skf->sqf"}> : () -> ()
    %cst_10 = arith.constant dense<0.000000e+00> : vector<4x8x16xf32>
    %17 = tpu.matmul %16, %5, %cst_10 {dimension_numbers = #tpu.dot_dimension_numbers<[2], [1], [1], [2], [0, 0, 0, 1, 1, 2], [0], [0]>} : vector<4x8x8xf32>, vector<4x8x16xf32>, vector<4x8x16xf32> -> vector<4x8x16xf32>
    "tpu.trace_stop"() : () -> ()
    %18 = tpu.transpose %17, [1, 0, 2] : vector<4x8x16xf32> -> vector<8x4x16xf32>
    %19 = vector.shape_cast %18 : vector<8x4x16xf32> to vector<8x64xf32>
    %c0_11 = arith.constant 0 : index
    %c0_12 = arith.constant 0 : index
    %c0_13 = arith.constant 0 : index
    %20 = vector.load %arg1[%c0_11, %c0_12, %c0_13] : memref<1x8x64xf32, #tpu.memory_space<vmem>>, vector<1x8x64xf32>
    %21 = vector.shape_cast %20 : vector<1x8x64xf32> to vector<8x64xf32>
    %22 = arith.addf %21, %19 : vector<8x64xf32>
    %cst_14 = arith.constant 5.000000e-01 : f32
    %23 = vector.broadcast %cst_14 : f32 to vector<8x64xf32>
    %24 = arith.mulf %22, %23 : vector<8x64xf32>
    %c0_15 = arith.constant 0 : index
    %c0_16 = arith.constant 0 : index
    %c0_17 = arith.constant 0 : index
    %25 = vector.load %arg5[%c0_15, %c0_16, %c0_17] : memref<2x64x192xf32, #tpu.memory_space<vmem>>, vector<1x64x192xf32>
    %26 = vector.shape_cast %25 : vector<1x64x192xf32> to vector<64x192xf32>
    %cst_18 = arith.constant dense<0.000000e+00> : vector<8x192xf32>
    %27 = tpu.matmul %24, %26, %cst_18 {dimension_numbers = #tpu.dot_dimension_numbers<[1], [0], [0], [1], [0, 0, 1, 1], [], []>} : vector<8x64xf32>, vector<64x192xf32>, vector<8x192xf32> -> vector<8x192xf32>
    %c0_19 = arith.constant 0 : index
    %c0_20 = arith.constant 0 : index
    %28 = vector.load %arg6[%c0_19, %c0_20] : memref<2x192xf32, #tpu.memory_space<vmem>>, vector<1x192xf32>
    %29 = vector.broadcast %28 : vector<1x192xf32> to vector<8x192xf32>
    %30 = arith.addf %27, %29 : vector<8x192xf32>
    %31 = vector.extract_strided_slice %30 {offsets = [0, 0], sizes = [8, 64], strides = [1, 1]} : vector<8x192xf32> to vector<8x64xf32>
    %32 = vector.shape_cast %31 : vector<8x64xf32> to vector<8x4x16xf32>
    %33 = tpu.transpose %32, [1, 0, 2] : vector<8x4x16xf32> -> vector<4x8x16xf32>
    %34 = vector.extract_strided_slice %30 {offsets = [0, 64], sizes = [8, 64], strides = [1, 1]} : vector<8x192xf32> to vector<8x64xf32>
    %35 = vector.shape_cast %34 : vector<8x64xf32> to vector<8x4x16xf32>
    %36 = tpu.transpose %35, [1, 0, 2] : vector<8x4x16xf32> -> vector<4x8x16xf32>
    %37 = vector.extract_strided_slice %30 {offsets = [0, 128], sizes = [8, 64], strides = [1, 1]} : vector<8x192xf32> to vector<8x64xf32>
    %38 = vector.shape_cast %37 : vector<8x64xf32> to vector<8x4x16xf32>
    %39 = tpu.transpose %38, [1, 0, 2] : vector<8x4x16xf32> -> vector<4x8x16xf32>
    "tpu.trace_start"() <{level = 10 : i32, message = "hqd,hkd->hqk"}> : () -> ()
    %cst_21 = arith.constant dense<0.000000e+00> : vector<4x8x8xf32>
    %40 = tpu.matmul %33, %36, %cst_21 {dimension_numbers = #tpu.dot_dimension_numbers<[2], [2], [1], [1], [0, 0, 0, 1, 1, 1], [0], [0]>} : vector<4x8x16xf32>, vector<4x8x16xf32>, vector<4x8x8xf32> -> vector<4x8x8xf32>
    "tpu.trace_stop"() : () -> ()
    %cst_22 = arith.constant dense<0xFF800000> : vector<4x8xf32>
    %41 = vector.multi_reduction <maximumf>, %40, %cst_22 [2] : vector<4x8x8xf32> to vector<4x8xf32>
    %42 = vector.shape_cast %41 : vector<4x8xf32> to vector<4x8x1xf32>
    %43 = vector.broadcast %42 : vector<4x8x1xf32> to vector<4x8x8xf32>
    %44 = arith.subf %40, %43 : vector<4x8x8xf32>
    %45 = math.exp %44 : vector<4x8x8xf32>
    %cst_23 = arith.constant dense<0.000000e+00> : vector<4x8xf32>
    %46 = vector.multi_reduction <add>, %45, %cst_23 [2] : vector<4x8x8xf32> to vector<4x8xf32>
    %47 = vector.shape_cast %46 : vector<4x8xf32> to vector<4x8x1xf32>
    %48 = tpu.reciprocal %47 {approx = true} : vector<4x8x1xf32> -> vector<4x8x1xf32>
    %49 = vector.broadcast %48 : vector<4x8x1xf32> to vector<4x8x8xf32>
    %50 = arith.mulf %45, %49 : vector<4x8x8xf32>
    "tpu.trace_start"() <{level = 10 : i32, message = "hqk,hkd->hqd"}> : () -> ()
    %cst_24 = arith.constant dense<0.000000e+00> : vector<4x8x16xf32>
    %51 = tpu.matmul %50, %39, %cst_24 {dimension_numbers = #tpu.dot_dimension_numbers<[2], [1], [1], [2], [0, 0, 0, 1, 1, 2], [0], [0]>} : vector<4x8x8xf32>, vector<4x8x16xf32>, vector<4x8x16xf32> -> vector<4x8x16xf32>
    "tpu.trace_stop"() : () -> ()
    %52 = tpu.transpose %51, [1, 0, 2] : vector<4x8x16xf32> -> vector<8x4x16xf32>
    %53 = vector.shape_cast %52 : vector<8x4x16xf32> to vector<8x64xf32>
    %c0_25 = arith.constant 0 : index
    %c0_26 = arith.constant 0 : index
    %c0_27 = arith.constant 0 : index
    %54 = vector.load %arg7[%c0_25, %c0_26, %c0_27] : memref<2x64x64xf32, #tpu.memory_space<vmem>>, vector<1x64x64xf32>
    %55 = vector.shape_cast %54 : vector<1x64x64xf32> to vector<64x64xf32>
    %cst_28 = arith.constant dense<0.000000e+00> : vector<8x64xf32>
    %56 = tpu.matmul %53, %55, %cst_28 {dimension_numbers = #tpu.dot_dimension_numbers<[1], [0], [0], [1], [0, 0, 1, 1], [], []>} : vector<8x64xf32>, vector<64x64xf32>, vector<8x64xf32> -> vector<8x64xf32>
    %c0_29 = arith.constant 0 : index
    %c0_30 = arith.constant 0 : index
    %57 = vector.load %arg8[%c0_29, %c0_30] : memref<2x64xf32, #tpu.memory_space<vmem>>, vector<1x64xf32>
    %58 = vector.broadcast %57 : vector<1x64xf32> to vector<8x64xf32>
    %59 = arith.addf %56, %58 : vector<8x64xf32>
    %60 = arith.addf %24, %59 : vector<8x64xf32>
    %c0_31 = arith.constant 0 : index
    %c0_32 = arith.constant 0 : index
    %61 = vector.load %arg13[%c0_31, %c0_32] : memref<2x64xf32, #tpu.memory_space<vmem>>, vector<1x64xf32>
    %c0_33 = arith.constant 0 : index
    %c0_34 = arith.constant 0 : index
    %62 = vector.load %arg14[%c0_33, %c0_34] : memref<2x64xf32, #tpu.memory_space<vmem>>, vector<1x64xf32>
    %cst_35 = arith.constant dense<0.000000e+00> : vector<8xf32>
    %63 = vector.multi_reduction <add>, %60, %cst_35 [1] : vector<8x64xf32> to vector<8xf32>
    %64 = vector.shape_cast %63 : vector<8xf32> to vector<8x1xf32>
    %cst_36 = arith.constant 6.400000e+01 : f32
    %65 = vector.broadcast %cst_36 : f32 to vector<8x1xf32>
    %66 = arith.divf %64, %65 : vector<8x1xf32>
    %67 = vector.broadcast %66 : vector<8x1xf32> to vector<8x64xf32>
    %68 = arith.subf %60, %67 : vector<8x64xf32>
    %69 = arith.mulf %68, %68 : vector<8x64xf32>
    %cst_37 = arith.constant dense<0.000000e+00> : vector<8xf32>
    %70 = vector.multi_reduction <add>, %69, %cst_37 [1] : vector<8x64xf32> to vector<8xf32>
    %71 = vector.shape_cast %70 : vector<8xf32> to vector<8x1xf32>
    %cst_38 = arith.constant 6.400000e+01 : f32
    %72 = vector.broadcast %cst_38 : f32 to vector<8x1xf32>
    %73 = arith.divf %71, %72 : vector<8x1xf32>
    %74 = vector.broadcast %66 : vector<8x1xf32> to vector<8x64xf32>
    %75 = arith.subf %60, %74 : vector<8x64xf32>
    %cst_39 = arith.constant 9.99999974E-6 : f32
    %76 = vector.broadcast %cst_39 : f32 to vector<8x1xf32>
    %77 = arith.addf %73, %76 : vector<8x1xf32>
    %78 = math.rsqrt %77 : vector<8x1xf32>
    %79 = vector.broadcast %78 : vector<8x1xf32> to vector<8x64xf32>
    %80 = arith.mulf %75, %79 : vector<8x64xf32>
    %81 = vector.broadcast %61 : vector<1x64xf32> to vector<8x64xf32>
    %82 = arith.mulf %80, %81 : vector<8x64xf32>
    %83 = vector.broadcast %62 : vector<1x64xf32> to vector<8x64xf32>
    %84 = arith.addf %82, %83 : vector<8x64xf32>
    %c0_40 = arith.constant 0 : index
    %c0_41 = arith.constant 0 : index
    %c0_42 = arith.constant 0 : index
    %85 = vector.load %arg9[%c0_40, %c0_41, %c0_42] : memref<2x64x256xf32, #tpu.memory_space<vmem>>, vector<1x64x256xf32>
    %86 = vector.shape_cast %85 : vector<1x64x256xf32> to vector<64x256xf32>
    %cst_43 = arith.constant dense<0.000000e+00> : vector<8x256xf32>
    %87 = tpu.matmul %84, %86, %cst_43 {dimension_numbers = #tpu.dot_dimension_numbers<[1], [0], [0], [1], [0, 0, 1, 1], [], []>} : vector<8x64xf32>, vector<64x256xf32>, vector<8x256xf32> -> vector<8x256xf32>
    %c0_44 = arith.constant 0 : index
    %c0_45 = arith.constant 0 : index
    %88 = vector.load %arg10[%c0_44, %c0_45] : memref<2x256xf32, #tpu.memory_space<vmem>>, vector<1x256xf32>
    %89 = vector.broadcast %88 : vector<1x256xf32> to vector<8x256xf32>
    %90 = arith.addf %87, %89 : vector<8x256xf32>
    %cst_46 = arith.constant 0.000000e+00 : f32
    %91 = vector.broadcast %cst_46 : f32 to vector<8x256xf32>
    %92 = arith.maximumf %90, %91 : vector<8x256xf32>
    %c0_47 = arith.constant 0 : index
    %c0_48 = arith.constant 0 : index
    %c0_49 = arith.constant 0 : index
    %93 = vector.load %arg11[%c0_47, %c0_48, %c0_49] : memref<2x256x64xf32, #tpu.memory_space<vmem>>, vector<1x256x64xf32>
    %94 = vector.shape_cast %93 : vector<1x256x64xf32> to vector<256x64xf32>
    %cst_50 = arith.constant dense<0.000000e+00> : vector<8x64xf32>
    %95 = tpu.matmul %92, %94, %cst_50 {dimension_numbers = #tpu.dot_dimension_numbers<[1], [0], [0], [1], [0, 0, 1, 1], [], []>} : vector<8x256xf32>, vector<256x64xf32>, vector<8x64xf32> -> vector<8x64xf32>
    %c0_51 = arith.constant 0 : index
    %c0_52 = arith.constant 0 : index
    %96 = vector.load %arg12[%c0_51, %c0_52] : memref<2x64xf32, #tpu.memory_space<vmem>>, vector<1x64xf32>
    %97 = vector.broadcast %96 : vector<1x64xf32> to vector<8x64xf32>
    %98 = arith.addf %95, %97 : vector<8x64xf32>
    %99 = arith.addf %84, %98 : vector<8x64xf32>
    %c0_53 = arith.constant 0 : index
    %c0_54 = arith.constant 0 : index
    %100 = vector.load %arg15[%c0_53, %c0_54] : memref<2x64xf32, #tpu.memory_space<vmem>>, vector<1x64xf32>
    %c0_55 = arith.constant 0 : index
    %c0_56 = arith.constant 0 : index
    %101 = vector.load %arg16[%c0_55, %c0_56] : memref<2x64xf32, #tpu.memory_space<vmem>>, vector<1x64xf32>
    %cst_57 = arith.constant dense<0.000000e+00> : vector<8xf32>
    %102 = vector.multi_reduction <add>, %99, %cst_57 [1] : vector<8x64xf32> to vector<8xf32>
    %103 = vector.shape_cast %102 : vector<8xf32> to vector<8x1xf32>
    %cst_58 = arith.constant 6.400000e+01 : f32
    %104 = vector.broadcast %cst_58 : f32 to vector<8x1xf32>
    %105 = arith.divf %103, %104 : vector<8x1xf32>
    %106 = vector.broadcast %105 : vector<8x1xf32> to vector<8x64xf32>
    %107 = arith.subf %99, %106 : vector<8x64xf32>
    %108 = arith.mulf %107, %107 : vector<8x64xf32>
    %cst_59 = arith.constant dense<0.000000e+00> : vector<8xf32>
    %109 = vector.multi_reduction <add>, %108, %cst_59 [1] : vector<8x64xf32> to vector<8xf32>
    %110 = vector.shape_cast %109 : vector<8xf32> to vector<8x1xf32>
    %cst_60 = arith.constant 6.400000e+01 : f32
    %111 = vector.broadcast %cst_60 : f32 to vector<8x1xf32>
    %112 = arith.divf %110, %111 : vector<8x1xf32>
    %113 = vector.broadcast %105 : vector<8x1xf32> to vector<8x64xf32>
    %114 = arith.subf %99, %113 : vector<8x64xf32>
    %cst_61 = arith.constant 9.99999974E-6 : f32
    %115 = vector.broadcast %cst_61 : f32 to vector<8x1xf32>
    %116 = arith.addf %112, %115 : vector<8x1xf32>
    %117 = math.rsqrt %116 : vector<8x1xf32>
    %118 = vector.broadcast %117 : vector<8x1xf32> to vector<8x64xf32>
    %119 = arith.mulf %114, %118 : vector<8x64xf32>
    %120 = vector.broadcast %100 : vector<1x64xf32> to vector<8x64xf32>
    %121 = arith.mulf %119, %120 : vector<8x64xf32>
    %122 = vector.broadcast %101 : vector<1x64xf32> to vector<8x64xf32>
    %123 = arith.addf %121, %122 : vector<8x64xf32>
    %c1 = arith.constant 1 : index
    %c0_62 = arith.constant 0 : index
    %c0_63 = arith.constant 0 : index
    %124 = vector.load %arg5[%c1, %c0_62, %c0_63] : memref<2x64x192xf32, #tpu.memory_space<vmem>>, vector<1x64x192xf32>
    %125 = vector.shape_cast %124 : vector<1x64x192xf32> to vector<64x192xf32>
    %cst_64 = arith.constant dense<0.000000e+00> : vector<8x192xf32>
    %126 = tpu.matmul %123, %125, %cst_64 {dimension_numbers = #tpu.dot_dimension_numbers<[1], [0], [0], [1], [0, 0, 1, 1], [], []>} : vector<8x64xf32>, vector<64x192xf32>, vector<8x192xf32> -> vector<8x192xf32>
    %c1_65 = arith.constant 1 : index
    %c0_66 = arith.constant 0 : index
    %127 = vector.load %arg6[%c1_65, %c0_66] : memref<2x192xf32, #tpu.memory_space<vmem>>, vector<1x192xf32>
    %128 = vector.broadcast %127 : vector<1x192xf32> to vector<8x192xf32>
    %129 = arith.addf %126, %128 : vector<8x192xf32>
    %130 = vector.extract_strided_slice %129 {offsets = [0, 0], sizes = [8, 64], strides = [1, 1]} : vector<8x192xf32> to vector<8x64xf32>
    %131 = vector.shape_cast %130 : vector<8x64xf32> to vector<8x4x16xf32>
    %132 = tpu.transpose %131, [1, 0, 2] : vector<8x4x16xf32> -> vector<4x8x16xf32>
    %133 = vector.extract_strided_slice %129 {offsets = [0, 64], sizes = [8, 64], strides = [1, 1]} : vector<8x192xf32> to vector<8x64xf32>
    %134 = vector.shape_cast %133 : vector<8x64xf32> to vector<8x4x16xf32>
    %135 = tpu.transpose %134, [1, 0, 2] : vector<8x4x16xf32> -> vector<4x8x16xf32>
    %136 = vector.extract_strided_slice %129 {offsets = [0, 128], sizes = [8, 64], strides = [1, 1]} : vector<8x192xf32> to vector<8x64xf32>
    %137 = vector.shape_cast %136 : vector<8x64xf32> to vector<8x4x16xf32>
    %138 = tpu.transpose %137, [1, 0, 2] : vector<8x4x16xf32> -> vector<4x8x16xf32>
    "tpu.trace_start"() <{level = 10 : i32, message = "hqd,hkd->hqk"}> : () -> ()
    %cst_67 = arith.constant dense<0.000000e+00> : vector<4x8x8xf32>
    %139 = tpu.matmul %132, %135, %cst_67 {dimension_numbers = #tpu.dot_dimension_numbers<[2], [2], [1], [1], [0, 0, 0, 1, 1, 1], [0], [0]>} : vector<4x8x16xf32>, vector<4x8x16xf32>, vector<4x8x8xf32> -> vector<4x8x8xf32>
    "tpu.trace_stop"() : () -> ()
    %cst_68 = arith.constant dense<0xFF800000> : vector<4x8xf32>
    %140 = vector.multi_reduction <maximumf>, %139, %cst_68 [2] : vector<4x8x8xf32> to vector<4x8xf32>
    %141 = vector.shape_cast %140 : vector<4x8xf32> to vector<4x8x1xf32>
    %142 = vector.broadcast %141 : vector<4x8x1xf32> to vector<4x8x8xf32>
    %143 = arith.subf %139, %142 : vector<4x8x8xf32>
    %144 = math.exp %143 : vector<4x8x8xf32>
    %cst_69 = arith.constant dense<0.000000e+00> : vector<4x8xf32>
    %145 = vector.multi_reduction <add>, %144, %cst_69 [2] : vector<4x8x8xf32> to vector<4x8xf32>
    %146 = vector.shape_cast %145 : vector<4x8xf32> to vector<4x8x1xf32>
    %147 = tpu.reciprocal %146 {approx = true} : vector<4x8x1xf32> -> vector<4x8x1xf32>
    %148 = vector.broadcast %147 : vector<4x8x1xf32> to vector<4x8x8xf32>
    %149 = arith.mulf %144, %148 : vector<4x8x8xf32>
    "tpu.trace_start"() <{level = 10 : i32, message = "hqk,hkd->hqd"}> : () -> ()
    %cst_70 = arith.constant dense<0.000000e+00> : vector<4x8x16xf32>
    %150 = tpu.matmul %149, %138, %cst_70 {dimension_numbers = #tpu.dot_dimension_numbers<[2], [1], [1], [2], [0, 0, 0, 1, 1, 2], [0], [0]>} : vector<4x8x8xf32>, vector<4x8x16xf32>, vector<4x8x16xf32> -> vector<4x8x16xf32>
    "tpu.trace_stop"() : () -> ()
    %151 = tpu.transpose %150, [1, 0, 2] : vector<4x8x16xf32> -> vector<8x4x16xf32>
    %152 = vector.shape_cast %151 : vector<8x4x16xf32> to vector<8x64xf32>
    %c1_71 = arith.constant 1 : index
    %c0_72 = arith.constant 0 : index
    %c0_73 = arith.constant 0 : index
    %153 = vector.load %arg7[%c1_71, %c0_72, %c0_73] : memref<2x64x64xf32, #tpu.memory_space<vmem>>, vector<1x64x64xf32>
    %154 = vector.shape_cast %153 : vector<1x64x64xf32> to vector<64x64xf32>
    %cst_74 = arith.constant dense<0.000000e+00> : vector<8x64xf32>
    %155 = tpu.matmul %152, %154, %cst_74 {dimension_numbers = #tpu.dot_dimension_numbers<[1], [0], [0], [1], [0, 0, 1, 1], [], []>} : vector<8x64xf32>, vector<64x64xf32>, vector<8x64xf32> -> vector<8x64xf32>
    %c1_75 = arith.constant 1 : index
    %c0_76 = arith.constant 0 : index
    %156 = vector.load %arg8[%c1_75, %c0_76] : memref<2x64xf32, #tpu.memory_space<vmem>>, vector<1x64xf32>
    %157 = vector.broadcast %156 : vector<1x64xf32> to vector<8x64xf32>
    %158 = arith.addf %155, %157 : vector<8x64xf32>
    %159 = arith.addf %123, %158 : vector<8x64xf32>
    %c1_77 = arith.constant 1 : index
    %c0_78 = arith.constant 0 : index
    %160 = vector.load %arg13[%c1_77, %c0_78] : memref<2x64xf32, #tpu.memory_space<vmem>>, vector<1x64xf32>
    %c1_79 = arith.constant 1 : index
    %c0_80 = arith.constant 0 : index
    %161 = vector.load %arg14[%c1_79, %c0_80] : memref<2x64xf32, #tpu.memory_space<vmem>>, vector<1x64xf32>
    %cst_81 = arith.constant dense<0.000000e+00> : vector<8xf32>
    %162 = vector.multi_reduction <add>, %159, %cst_81 [1] : vector<8x64xf32> to vector<8xf32>
    %163 = vector.shape_cast %162 : vector<8xf32> to vector<8x1xf32>
    %cst_82 = arith.constant 6.400000e+01 : f32
    %164 = vector.broadcast %cst_82 : f32 to vector<8x1xf32>
    %165 = arith.divf %163, %164 : vector<8x1xf32>
    %166 = vector.broadcast %165 : vector<8x1xf32> to vector<8x64xf32>
    %167 = arith.subf %159, %166 : vector<8x64xf32>
    %168 = arith.mulf %167, %167 : vector<8x64xf32>
    %cst_83 = arith.constant dense<0.000000e+00> : vector<8xf32>
    %169 = vector.multi_reduction <add>, %168, %cst_83 [1] : vector<8x64xf32> to vector<8xf32>
    %170 = vector.shape_cast %169 : vector<8xf32> to vector<8x1xf32>
    %cst_84 = arith.constant 6.400000e+01 : f32
    %171 = vector.broadcast %cst_84 : f32 to vector<8x1xf32>
    %172 = arith.divf %170, %171 : vector<8x1xf32>
    %173 = vector.broadcast %165 : vector<8x1xf32> to vector<8x64xf32>
    %174 = arith.subf %159, %173 : vector<8x64xf32>
    %cst_85 = arith.constant 9.99999974E-6 : f32
    %175 = vector.broadcast %cst_85 : f32 to vector<8x1xf32>
    %176 = arith.addf %172, %175 : vector<8x1xf32>
    %177 = math.rsqrt %176 : vector<8x1xf32>
    %178 = vector.broadcast %177 : vector<8x1xf32> to vector<8x64xf32>
    %179 = arith.mulf %174, %178 : vector<8x64xf32>
    %180 = vector.broadcast %160 : vector<1x64xf32> to vector<8x64xf32>
    %181 = arith.mulf %179, %180 : vector<8x64xf32>
    %182 = vector.broadcast %161 : vector<1x64xf32> to vector<8x64xf32>
    %183 = arith.addf %181, %182 : vector<8x64xf32>
    %c1_86 = arith.constant 1 : index
    %c0_87 = arith.constant 0 : index
    %c0_88 = arith.constant 0 : index
    %184 = vector.load %arg9[%c1_86, %c0_87, %c0_88] : memref<2x64x256xf32, #tpu.memory_space<vmem>>, vector<1x64x256xf32>
    %185 = vector.shape_cast %184 : vector<1x64x256xf32> to vector<64x256xf32>
    %cst_89 = arith.constant dense<0.000000e+00> : vector<8x256xf32>
    %186 = tpu.matmul %183, %185, %cst_89 {dimension_numbers = #tpu.dot_dimension_numbers<[1], [0], [0], [1], [0, 0, 1, 1], [], []>} : vector<8x64xf32>, vector<64x256xf32>, vector<8x256xf32> -> vector<8x256xf32>
    %c1_90 = arith.constant 1 : index
    %c0_91 = arith.constant 0 : index
    %187 = vector.load %arg10[%c1_90, %c0_91] : memref<2x256xf32, #tpu.memory_space<vmem>>, vector<1x256xf32>
    %188 = vector.broadcast %187 : vector<1x256xf32> to vector<8x256xf32>
    %189 = arith.addf %186, %188 : vector<8x256xf32>
    %cst_92 = arith.constant 0.000000e+00 : f32
    %190 = vector.broadcast %cst_92 : f32 to vector<8x256xf32>
    %191 = arith.maximumf %189, %190 : vector<8x256xf32>
    %c1_93 = arith.constant 1 : index
    %c0_94 = arith.constant 0 : index
    %c0_95 = arith.constant 0 : index
    %192 = vector.load %arg11[%c1_93, %c0_94, %c0_95] : memref<2x256x64xf32, #tpu.memory_space<vmem>>, vector<1x256x64xf32>
    %193 = vector.shape_cast %192 : vector<1x256x64xf32> to vector<256x64xf32>
    %cst_96 = arith.constant dense<0.000000e+00> : vector<8x64xf32>
    %194 = tpu.matmul %191, %193, %cst_96 {dimension_numbers = #tpu.dot_dimension_numbers<[1], [0], [0], [1], [0, 0, 1, 1], [], []>} : vector<8x256xf32>, vector<256x64xf32>, vector<8x64xf32> -> vector<8x64xf32>
    %c1_97 = arith.constant 1 : index
    %c0_98 = arith.constant 0 : index
    %195 = vector.load %arg12[%c1_97, %c0_98] : memref<2x64xf32, #tpu.memory_space<vmem>>, vector<1x64xf32>
    %196 = vector.broadcast %195 : vector<1x64xf32> to vector<8x64xf32>
    %197 = arith.addf %194, %196 : vector<8x64xf32>
    %198 = arith.addf %183, %197 : vector<8x64xf32>
    %c1_99 = arith.constant 1 : index
    %c0_100 = arith.constant 0 : index
    %199 = vector.load %arg15[%c1_99, %c0_100] : memref<2x64xf32, #tpu.memory_space<vmem>>, vector<1x64xf32>
    %c1_101 = arith.constant 1 : index
    %c0_102 = arith.constant 0 : index
    %200 = vector.load %arg16[%c1_101, %c0_102] : memref<2x64xf32, #tpu.memory_space<vmem>>, vector<1x64xf32>
    %cst_103 = arith.constant dense<0.000000e+00> : vector<8xf32>
    %201 = vector.multi_reduction <add>, %198, %cst_103 [1] : vector<8x64xf32> to vector<8xf32>
    %202 = vector.shape_cast %201 : vector<8xf32> to vector<8x1xf32>
    %cst_104 = arith.constant 6.400000e+01 : f32
    %203 = vector.broadcast %cst_104 : f32 to vector<8x1xf32>
    %204 = arith.divf %202, %203 : vector<8x1xf32>
    %205 = vector.broadcast %204 : vector<8x1xf32> to vector<8x64xf32>
    %206 = arith.subf %198, %205 : vector<8x64xf32>
    %207 = arith.mulf %206, %206 : vector<8x64xf32>
    %cst_105 = arith.constant dense<0.000000e+00> : vector<8xf32>
    %208 = vector.multi_reduction <add>, %207, %cst_105 [1] : vector<8x64xf32> to vector<8xf32>
    %209 = vector.shape_cast %208 : vector<8xf32> to vector<8x1xf32>
    %cst_106 = arith.constant 6.400000e+01 : f32
    %210 = vector.broadcast %cst_106 : f32 to vector<8x1xf32>
    %211 = arith.divf %209, %210 : vector<8x1xf32>
    %212 = vector.broadcast %204 : vector<8x1xf32> to vector<8x64xf32>
    %213 = arith.subf %198, %212 : vector<8x64xf32>
    %cst_107 = arith.constant 9.99999974E-6 : f32
    %214 = vector.broadcast %cst_107 : f32 to vector<8x1xf32>
    %215 = arith.addf %211, %214 : vector<8x1xf32>
    %216 = math.rsqrt %215 : vector<8x1xf32>
    %217 = vector.broadcast %216 : vector<8x1xf32> to vector<8x64xf32>
    %218 = arith.mulf %213, %217 : vector<8x64xf32>
    %219 = vector.broadcast %199 : vector<1x64xf32> to vector<8x64xf32>
    %220 = arith.mulf %218, %219 : vector<8x64xf32>
    %221 = vector.broadcast %200 : vector<1x64xf32> to vector<8x64xf32>
    %222 = arith.addf %220, %221 : vector<8x64xf32>
    %223 = vector.extract_strided_slice %222 {offsets = [7, 0], sizes = [1, 64], strides = [1, 1]} : vector<8x64xf32> to vector<1x64xf32>
    %c0_108 = arith.constant 0 : index
    %c0_109 = arith.constant 0 : index
    %224 = vector.load %arg17[%c0_108, %c0_109] : memref<64x128xf32, #tpu.memory_space<vmem>>, vector<64x128xf32>
    %cst_110 = arith.constant dense<0.000000e+00> : vector<1x128xf32>
    %225 = tpu.matmul %223, %224, %cst_110 {dimension_numbers = #tpu.dot_dimension_numbers<[1], [0], [0], [1], [0, 0, 1, 1], [], []>} : vector<1x64xf32>, vector<64x128xf32>, vector<1x128xf32> -> vector<1x128xf32>
    %c0_111 = arith.constant 0 : index
    %c0_112 = arith.constant 0 : index
    %226 = vector.load %arg18[%c0_111, %c0_112] : memref<1x128xf32, #tpu.memory_space<vmem>>, vector<1x128xf32>
    %227 = arith.addf %225, %226 : vector<1x128xf32>
    %c0_113 = arith.constant 0 : index
    %c0_114 = arith.constant 0 : index
    %c0_115 = arith.constant 0 : index
    %228 = vector.load %arg19[%c0_113, %c0_114, %c0_115] : memref<1x1x128xf32, #tpu.memory_space<vmem>>, vector<1x1x128xf32>
    %229 = vector.shape_cast %228 : vector<1x1x128xf32> to vector<1x128xf32>
    %230 = vector.shape_cast %227 : vector<1x128xf32> to vector<1x1x128xf32>
    tpu.vector_store %arg19[%c0_113, %c0_114, %c0_115], %230 {strides = array<i32>} : memref<1x1x128xf32, #tpu.memory_space<vmem>>, vector<1x1x128xf32>,
    return
  }
  func.func @transform_0(%arg0: i32) -> (i32, i32, i32) {
    %c0_i32 = arith.constant 0 : i32
    %c0_i32_0 = arith.constant 0 : i32
    %c0_i32_1 = arith.constant 0 : i32
    return %arg0, %c0_i32, %c0_i32_0 : i32, i32, i32
  }
  func.func @transform_1(%arg0: i32) -> (i32, i32, i32, i32) {
    %c0_i32 = arith.constant 0 : i32
    %c0_i32_0 = arith.constant 0 : i32
    %c0_i32_1 = arith.constant 0 : i32
    %c0_i32_2 = arith.constant 0 : i32
    return %arg0, %c0_i32, %c0_i32_0, %c0_i32_1 : i32, i32, i32, i32
  }
  func.func @transform_2(%arg0: i32) -> (i32, i32, i32) {
    %c0_i32 = arith.constant 0 : i32
    %c0_i32_0 = arith.constant 0 : i32
    %c0_i32_1 = arith.constant 0 : i32
    %c0_i32_2 = arith.constant 0 : i32
    return %c0_i32, %c0_i32_0, %c0_i32_1 : i32, i32, i32
  }
  func.func @transform_3(%arg0: i32) -> (i32, i32) {
    %c0_i32 = arith.constant 0 : i32
    %c0_i32_0 = arith.constant 0 : i32
    %c0_i32_1 = arith.constant 0 : i32
    return %c0_i32, %c0_i32_0 : i32, i32
  }
  func.func @transform_4(%arg0: i32) -> (i32, i32, i32) {
    %c0_i32 = arith.constant 0 : i32
    %c0_i32_0 = arith.constant 0 : i32
    %c0_i32_1 = arith.constant 0 : i32
    %c0_i32_2 = arith.constant 0 : i32
    return %c0_i32, %c0_i32_0, %c0_i32_1 : i32, i32, i32
  }
  func.func @transform_5(%arg0: i32) -> (i32, i32) {
    %c0_i32 = arith.constant 0 : i32
    %c0_i32_0 = arith.constant 0 : i32
    %c0_i32_1 = arith.constant 0 : i32
    return %c0_i32, %c0_i32_0 : i32, i32
  }
  func.func @transform_6(%arg0: i32) -> (i32, i32, i32) {
    %c0_i32 = arith.constant 0 : i32
    %c0_i32_0 = arith.constant 0 : i32
    %c0_i32_1 = arith.constant 0 : i32
    %c0_i32_2 = arith.constant 0 : i32
    return %c0_i32, %c0_i32_0, %c0_i32_1 : i32, i32, i32
  }
  func.func @transform_7(%arg0: i32) -> (i32, i32) {
    %c0_i32 = arith.constant 0 : i32
    %c0_i32_0 = arith.constant 0 : i32
    %c0_i32_1 = arith.constant 0 : i32
    return %c0_i32, %c0_i32_0 : i32, i32
  }
  func.func @transform_8(%arg0: i32) -> (i32, i32, i32) {
    %c0_i32 = arith.constant 0 : i32
    %c0_i32_0 = arith.constant 0 : i32
    %c0_i32_1 = arith.constant 0 : i32
    %c0_i32_2 = arith.constant 0 : i32
    return %c0_i32, %c0_i32_0, %c0_i32_1 : i32, i32, i32
  }
  func.func @transform_9(%arg0: i32) -> (i32, i32) {
    %c0_i32 = arith.constant 0 : i32
    %c0_i32_0 = arith.constant 0 : i32
    %c0_i32_1 = arith.constant 0 : i32
    return %c0_i32, %c0_i32_0 : i32, i32
  }
  func.func @transform_10(%arg0: i32) -> (i32, i32, i32) {
    %c0_i32 = arith.constant 0 : i32
    %c0_i32_0 = arith.constant 0 : i32
    %c0_i32_1 = arith.constant 0 : i32
    %c0_i32_2 = arith.constant 0 : i32
    return %c0_i32, %c0_i32_0, %c0_i32_1 : i32, i32, i32
  }
  func.func @transform_11(%arg0: i32) -> (i32, i32) {
    %c0_i32 = arith.constant 0 : i32
    %c0_i32_0 = arith.constant 0 : i32
    %c0_i32_1 = arith.constant 0 : i32
    return %c0_i32, %c0_i32_0 : i32, i32
  }
  func.func @transform_12(%arg0: i32) -> (i32, i32) {
    %c0_i32 = arith.constant 0 : i32
    %c0_i32_0 = arith.constant 0 : i32
    %c0_i32_1 = arith.constant 0 : i32
    return %c0_i32, %c0_i32_0 : i32, i32
  }
  func.func @transform_13(%arg0: i32) -> (i32, i32) {
    %c0_i32 = arith.constant 0 : i32
    %c0_i32_0 = arith.constant 0 : i32
    %c0_i32_1 = arith.constant 0 : i32
    return %c0_i32, %c0_i32_0 : i32, i32
  }
  func.func @transform_14(%arg0: i32) -> (i32, i32) {
    %c0_i32 = arith.constant 0 : i32
    %c0_i32_0 = arith.constant 0 : i32
    %c0_i32_1 = arith.constant 0 : i32
    return %c0_i32, %c0_i32_0 : i32, i32
  }
  func.func @transform_15(%arg0: i32) -> (i32, i32) {
    %c0_i32 = arith.constant 0 : i32
    %c0_i32_0 = arith.constant 0 : i32
    %c0_i32_1 = arith.constant 0 : i32
    return %c0_i32, %c0_i32_0 : i32, i32
  }
  func.func @transform_16(%arg0: i32) -> (i32, i32) {
    %c0_i32 = arith.constant 0 : i32
    %c0_i32_0 = arith.constant 0 : i32
    %c0_i32_1 = arith.constant 0 : i32
    return %c0_i32, %c0_i32_0 : i32, i32
  }
  func.func @transform_17(%arg0: i32) -> (i32, i32) {
    %c0_i32 = arith.constant 0 : i32
    %c0_i32_0 = arith.constant 0 : i32
    %c0_i32_1 = arith.constant 0 : i32
    return %c0_i32, %c0_i32_0 : i32, i32
  }
  func.func @transform_18(%arg0: i32) -> (i32, i32, i32) {
    %c0_i32 = arith.constant 0 : i32
    %c0_i32_0 = arith.constant 0 : i32
    %c0_i32_1 = arith.constant 0 : i32
    return %arg0, %c0_i32, %c0_i32_0 : i32, i32, i32
  }
}

</mosaic_0001>

<bundles_post_ra>
// kernel: custom_transformer_forward.1
= control target key start
LH: loop header
LB: loop body
LE: loop exit
PB: predicated region body
PF: predicated region fallthrough
CT: control target
= control target key end

     0   :  { %s5528_s27 = smov 0   ;;  %s6495_s0 = inlined_call_operand.vmem [shape: f32[2,8,64], index: 0, kind: input, shape index: {}]   ;;  %s6496_s1 = inlined_call_operand.vmem [shape: f32[2,4,8,16], index: 1, kind: input, shape index: {}]   ;;  %s6497_s2 = inlined_call_operand.vmem [shape: f32[4,8,8], index: 2, kind: input, shape index: {}]   ;;  %s6498_s3 = inlined_call_operand.vmem [shape: f32[16,16], index: 3, kind: input, shape index: {}]   ;;  %s6499_s4 = inlined_call_operand.vmem [shape: f32[2,64,192], index: 4, kind: input, shape index: {}]   ;;  %s6500_s5 = inlined_call_operand.vmem [shape: f32[2,192], index: 5, kind: input, shape index: {}]   ;;  %s6501_s6 = inlined_call_operand.vmem [shape: f32[2,64,64], index: 6, kind: input, shape index: {}]   ;;  %s6502_s7 = inlined_call_operand.vmem [shape: f32[2,64], index: 7, kind: input, shape index: {}]   ;;  %s6503_s8 = inlined_call_operand.vmem [shape: f32[2,64,256], index: 8, kind: input, shape index: {}]   ;;  %s6504_s9 = inlined_call_operand.vmem [shape: f32[2,256], index: 9, kind: input, shape index: {}]   ;;  %s6505_s10 = inlined_call_operand.vmem [shape: f32[2,256,64], index: 10, kind: input, shape index: {}]   ;;  %s6506_s11 = inlined_call_operand.vmem [shape: f32[2,64], index: 11, kind: input, shape index: {}]   ;;  %s6507_s12 = inlined_call_operand.vmem [shape: f32[2,64], index: 12, kind: input, shape index: {}]   ;;  %s6508_s13 = inlined_call_operand.vmem [shape: f32[2,64], index: 13, kind: input, shape index: {}]   ;;  %s6509_s14 = inlined_call_operand.vmem [shape: f32[2,64], index: 14, kind: input, shape index: {}]   ;;  %s6510_s15 = inlined_call_operand.vmem [shape: f32[2,64], index: 15, kind: input, shape index: {}]   ;;  %s6511_s16 = inlined_call_operand.vmem [shape: f32[64,128], index: 16, kind: input, shape index: {}]   ;;  %s6512_s17 = inlined_call_operand.vmem [shape: f32[1,128], index: 17, kind: input, shape index: {}]   ;;  %s6513_s18 = inlined_call_operand.vmem [shape: f32[2,1,128], index: 18, kind: output, shape index: {}]  }
   0x1   :  { %6524 = sst [smem:[#allocation2_spill]] %s6495_s0 }
   0x2   :  { %6525 = sst [smem:[#allocation3_spill]] %s6496_s1 }
   0x3   :  { %6526 = sst [smem:[#allocation4_spill]] %s6497_s2 }
   0x4 LB: > { %s4705_s28 = sadd.s32 4294967295, %s5419_s27   ;;  %p4709_p0 = scmp.ge.s32.totalorder %s5419_s27, 1  ;;  %s5419_s27 = sphi %s5528_s27, %s28_s27  }
   0x5   : > { %p521_p1 = scmp.lt.s32.totalorder %s5419_s27, 3 }
   0x7   : > { %p522_p2 = pnand %p4709_p0, %p521_p1 }
   0x8   : > { %s6527_s0 = sld [smem:[#allocation4_spill]] (!%p522_p2)  ;;  %vm697_vm0 = vcmask (!%p522_p2), 64512   ;;  %p577_p3 = scmp.lt.s32.totalorder (!%p522_p2), %s4705_s28, 1  ;;  %v593_v6 = vld [vmem:[%s6498_s3] sm:$0xff] (!%p522_p2)  ;;  %v594_v7 = vld [vmem:[%s6498_s3 + $0x8] sm:$0xff] (!%p522_p2)  ;;  %vm595_vm1 = vcmask (!%p522_p2), 130048  }
   0x9   : > { %525 = sbr.rel (%p522_p2) target bundleno = 6254 (0x186e), region = 92  ;;  %v5169_v8 = vpack.c.bf16 (!%p522_p2), %v594_v7, %v593_v6  ;;  %s6528_s1 = sld [smem:[#allocation3_spill]] (!%p522_p2)  ;;  %v5421_v35 = vmov (!%p522_p2), 0.0   ;;  %vm5422_vm2 = vmmov (!%p522_p2), 0   ;;  %v1191_v52 = vld [vmem:[%s6499_s4 + $0x8] sm:$0xff] (!%p522_p2)  ;;  %v1193_v53 = vld [vmem:[%s6499_s4 + $0x18] sm:$0xff] (!%p522_p2) }
   0xa   : > { %5022 = vmatprep.subr.mxu1 (!%p522_p2), %v5421_v35  ;;  %5024 = vmatprep.mubr.msk.f32.mxu1 (!%p522_p2), %vm5422_vm2, %v5421_v35  ;;  %v1190_v54 = vld [vmem:[%s6499_s4] sm:$0xff] (!%p522_p2)  ;;  %v5173_v55 = vpack.c.bf16 (!%p522_p2), %v1193_v53, %v1191_v52  ;;  %v1192_v56 = vld [vmem:[%s6499_s4 + $0x10] sm:$0xff] (!%p522_p2)  ;;  %v1195_v57 = vld [vmem:[%s6499_s4 + $0x28] sm:$0xff] (!%p522_p2)  ;;  %s6521_s30 = smov (!%p522_p2), 32   ;;  %s6522_s19 = smov (!%p522_p2), 16   ;;  %vm1183_vm3 = vcmask (!%p522_p2), 261120  }
   0xb   : > { %5170 = vmatprep.subr.bf16.mxu0 (!%p522_p2), %v5169_v8  ;;  %v1197_v58 = vld [vmem:[%s6499_s4 + $0x38] sm:$0xff] (!%p522_p2)  ;;  %v5175_v59 = vpack.c.bf16 (!%p522_p2), %v1192_v56, %v1190_v54  ;;  %v1194_v61 = vld [vmem:[%s6499_s4 + $0x20] sm:$0xff] (!%p522_p2)  ;;  %v1196_v62 = vld [vmem:[%s6499_s4 + $0x30] sm:$0xff] (!%p522_p2)  ;;  %s6529_s2 = sld [smem:[#allocation2_spill]] (!%p522_p2)  ;;  %vm1185_vm4 = vcmask (!%p522_p2), 392192   ;;  %vm1218_vm5 = vcmask (!%p522_p2), 523264  }
   0xc   : > { %5172 = vmatpush3.bf16.msra.mxu0 (!%p522_p2), %v5169_v8  ;;  %v5177_v60 = vpack.c.bf16 (!%p522_p2), %v1197_v58, %v1195_v57  ;;  %v5179_v63 = vpack.c.bf16 (!%p522_p2), %v1196_v62, %v1194_v61  ;;  %s5428_s26 = smov (!%p522_p2), 96   ;;  %s6517_s21 = smov (!%p522_p2), 80  }
   0xd   : > { %5012 = vmatprep.subr.mxu0 (!%p522_p2), %v5421_v35 }
   0xe   : > { %v693_v0 = vld [vmem:[%s6527_s0] sm:$0xff] (!%p522_p2)  ;;  %v695_v1 = vld [vmem:[%s6527_s0 + $0x10] sm:$0xff] (!%p522_p2)  ;;  %v694_v2 = vld [vmem:[%s6527_s0 + $0x8] sm:$0xff] (!%p522_p2) }
   0xf   : > { %v698_v3 = vsel (!%p522_p2), %vm697_vm0, %v693_v0, -inf  ;;  %v704_v4 = vsel (!%p522_p2), %vm697_vm0, %v695_v1, -inf  ;;  %v696_v5 = vld [vmem:[%s6527_s0 + $0x18] sm:$0xff] (!%p522_p2)  ;;  %v701_v9 = vsel (!%p522_p2), %vm697_vm0, %v694_v2, -inf }
  0x10   : > { %699 = vmax.xlane.f32.xlu0 %v698_v3  ;;  %705 = vmax.xlane.f32.xlu1 %v704_v4  ;;  %s6537_s28 = smov (!%p577_p3, %s4705_s28), 1  ;;  %v707_v10 = vsel %vm697_vm0, %v696_v5, -inf }
  0x11   : > { %s4858_s29 = sshll.u32 %s6537_s28, 5 }
  0x12   : > { %s585_s20 = scalar_lea.vmem %s6528_s1, %s4858_s29  ;;  %s6523_s1 = smov 48  }
  0x13   : > { %v589_v11 = vld [vmem:[%s585_s20] sm:$0xff]  ;;  %v590_v12 = vld [vmem:[%s585_s20 + $0x8] sm:$0xff]  ;;  %v591_v13 = vld [vmem:[%s585_s20 + $0x10] sm:$0xff]  ;;  %s6519_s29 = smov 112  }
  0x14   : > { %702 = vmax.xlane.f32.xlu0 %v701_v9  ;;  %708 = vmax.xlane.f32.xlu1 %v707_v10  ;;  %v592_v14 = vld [vmem:[%s585_s20 + $0x18] sm:$0xff]  ;;  %s4710_s20 = sshll.u32 %s6537_s28, 3 }
  0x15   : > { %5006 = vmatprep.mubr.msk.f32.mxu0 %vm595_vm1, %v589_v11  ;;  %s580_s23 = scalar_lea.vmem %s6529_s2, %s4710_s20  ;;  %s6515_s20 = smov 64  }
  0x16   : > { %5007 = vmatmul.mubr.msk.f32.vlgmr.msra.gmra.mrb[0].mxu0 %vm595_vm1, %v590_v12 }
  0x17   : > { %5009 = vmatprep.mubr.msk.f32.mxu0 %vm595_vm1, %v591_v13 }
  0x1a   : > { %5010 = vmatmul.mubr.msk.f32.gmra.mrb[2].mxu0 %vm595_vm1, %v592_v14 }
  0x1b   : > { %5014 = vmatprep.mubr.msk.f32.mxu0 %vm5422_vm2, %v5421_v35 }
  0x9d   : > { %v700_v15 = vpop.xlane.xlu0 %699  ;;  %v706_v16 = vpop.xlane.xlu1 %705 }
  0x9e   : > { %v710_v17 = vsub.f32 %v693_v0, %v700_v15  ;;  %v712_v18 = vsub.f32 %v695_v1, %v706_v16  ;;  %v5423_v0 = vmov 1983009808  }
  0x9f   : > { %v1037_v1 = vunpack.c.l.s4 %v5423_v0 }
  0xa0   : > { %v714_v19 = vmul.f32 1.442695, %v710_v17  ;;  %v718_v20 = vmul.f32 1.442695, %v712_v18 }
  0xa1   : > { %v703_v21 = vpop.xlane.xlu0 %702  ;;  %v709_v22 = vpop.xlane.xlu1 %708  ;;  %v1038_v7 = vunpack.c.0.s8 %v1037_v1 }
  0xa2   : > { %5357 = vpow2.f32 %v714_v19  ;;  %v711_v23 = vsub.f32 %v694_v2, %v703_v21  ;;  %v713_v24 = vsub.f32 %v696_v5, %v709_v22  ;;  %v1039_v2 = vlaneseq }
  0xa3   : > { %5359 = vpow2.f32 %v718_v20  ;;  %v5424_v5 = vmov 1934713408  }
  0xa4   : > { %v716_v25 = vmul.f32 1.442695, %v711_v23  ;;  %v720_v26 = vmul.f32 1.442695, %v713_v24  ;;  %v1069_v6 = vunpack.c.l.s4 %v5424_v5  ;;  %v5616_v8 = vshrl.u32 %v1039_v2, 7 }
  0xa6   : > { %5361 = vpow2.f32 %v716_v25  ;;  %v1070_v15 = vunpack.c.0.s8 %v1069_v6  ;;  %v5619_v16 = vsub.s32 %v1038_v7, %v5616_v8  ;;  %v1187_v6 = vld [vmem:[%s580_s23] sm:$0xff]  ;;  %s6535_s23 = smov 32  }
  0xa7   : > { %5363 = vpow2.f32 %v720_v26 }
  0xa8   : > { %v5622_v21 = vsub.s32 %v1070_v15, %v5616_v8 }
  0xac   : > { %v5358_v27 = vpop.eup %5357 }
  0xad   : > { %v5360_v28 = vpop.eup %5359  ;;  %v722_v29 = vsel %vm697_vm0, %v5358_v27, 0.0 }
  0xae   : > { %723 = vadd.xlane.f32.xlu0 %v722_v29  ;;  %v728_v30 = vsel %vm697_vm0, %v5360_v28, 0.0 }
  0xb0   : > { %v5362_v31 = vpop.eup %5361 }
  0xb1   : > { %v5364_v32 = vpop.eup %5363  ;;  %v725_v33 = vsel %vm697_vm0, %v5362_v31, 0.0 }
  0xb2   : > { %729 = vadd.xlane.f32.xlu0 %v728_v30  ;;  %726 = vadd.xlane.f32.xlu1 %v725_v33  ;;  %v731_v34 = vsel %vm697_vm0, %v5364_v32, 0.0  ;;  %v1199_v30 = vld [vmem:[%s6499_s4 + $0x48] sm:$0xff]  ;;  %v1198_v33 = vld [vmem:[%s6499_s4 + $0x40] sm:$0xff] }
  0xb6   : > { %732 = vadd.xlane.f32.xlu1 %v731_v34  ;;  %v1200_v34 = vld [vmem:[%s6499_s4 + $0x50] sm:$0xff] }
  0xe9   : > { %v5008_v36 = vpop.f32.mrb[0].mxu0 }
  0xea   : > { %v674_v37 = vpop.f32.mrb[1].mxu0 }
  0xeb   : > { %5013 = vmatpush3.msra.mxu0 %v674_v37 }
  0xec   : > { %5017 = vmatprep.subr.mxu0 %v5421_v35 }
  0xed   : > { %v5011_v38 = vpop.f32.mrb[2].mxu0 }
  0xee   : > { %v684_v39 = vpop.f32.mrb[3].mxu0 }
  0xef   : > { %5023 = vmatpush3.msra.mxu1 %v684_v39 }
  0xf0   : > { %5174 = vmatprep.subr.bf16.mxu1 %v5173_v55 }
 0x13b   : > { %v724_v40 = vpop.xlane.xlu0 %723 }
 0x13c   : > { %5365 = vrcp.f32 %v724_v40  ;;  %v5183_v40 = vpack.c.bf16 %v1200_v34, %v1198_v33 }
 0x13f   : > { %v727_v41 = vpop.xlane.xlu1 %726  ;;  %v730_v42 = vpop.xlane.xlu0 %729 }
 0x140   : > { %5367 = vrcp.f32 %v727_v41 }
 0x141   : > { %5369 = vrcp.f32 %v730_v42 }
 0x143   : > { %v733_v43 = vpop.xlane.xlu1 %732 }
 0x144   : > { %5371 = vrcp.f32 %v733_v43 }
 0x146   : > { %v5366_v44 = vpop.eup %5365 }
 0x147   : > { %v738_v45 = vmul.f32 %v5366_v44, %v5358_v27 }
 0x149   : > { %5015 = vmatmul.mubr.msk.f32.vlgmr.msra.gmra.mrb[4].mxu0 %vm697_vm0, %v738_v45  ;;  %v1203_v45 = vld [vmem:[%s6499_s4 + $0x68] sm:$0xff] }
 0x14a   : > { %v5368_v46 = vpop.eup %5367  ;;  %5018 = vmatpush3.msra.mxu0 %v5008_v36  ;;  %5019 = vmatprep.mubr.msk.f32.mxu0 %vm5422_vm2, %v5421_v35 }
 0x14b   : > { %v5370_v47 = vpop.eup %5369  ;;  %v739_v48 = vmul.f32 %v5368_v46, %v5362_v31  ;;  %5027 = vmatprep.subr.mxu0 %v5421_v35  ;;  %v1201_v31 = vld [vmem:[%s6499_s4 + $0x58] sm:$0xff] }
 0x14c   : > { %v740_v49 = vmul.f32 %v5370_v47, %v5360_v28  ;;  %v1205_v46 = vld [vmem:[%s6499_s4 + $0x78] sm:$0xff] }
 0x14d   : > { %5020 = vmatmul.mubr.msk.f32.vlgmr.msra.gmra.mrb[6].mxu0 %vm697_vm0, %v739_v48  ;;  %v5185_v47 = vpack.c.bf16 %v1205_v46, %v1203_v45  ;;  %v1202_v48 = vld [vmem:[%s6499_s4 + $0x60] sm:$0xff] }
 0x14e   : > { %v5372_v50 = vpop.eup %5371  ;;  %5025 = vmatmul.mubr.msk.f32.vlgmr.msra.gmra.mrb[0].mxu1 %vm697_vm0, %v740_v49  ;;  %5028 = vmatpush3.msra.mxu0 %v5011_v38  ;;  %v1204_v49 = vld [vmem:[%s6499_s4 + $0x70] sm:$0xff] }
 0x14f   : > { %v741_v51 = vmul.f32 %v5372_v50, %v5364_v32  ;;  %5029 = vmatprep.mubr.msk.f32.mxu0 %vm5422_vm2, %v5421_v35  ;;  %1286 = vmatprep.mubr.f32.mxu1 %v5421_v35  ;;  %v5181_v32 = vpack.c.bf16 %v1201_v31, %v1199_v30  ;;  %v5187_v54 = vpack.c.bf16 %v1204_v49, %v1202_v48 }
 0x150   : > { %5032 = vmatprep.subr.mxu0 %v5421_v35  ;;  %5176 = vmatpush1.bf16.msra.mxu1 %v5175_v59 }
 0x151   : > { %5030 = vmatmul.mubr.msk.f32.vlgmr.msra.gmra.mrb[8].mxu0 %vm697_vm0, %v741_v51  ;;  %5178 = vmatprep.subr.bf16.mxu1 %v5177_v60 }
 0x152   : > { %5034 = vmatprep.mubr.msk.f32.mxu0 %vm5422_vm2, %v5421_v35 }
 0x154   : > { %5180 = vmatpush1.bf16.msra.mxu1 %v5179_v63 }
 0x155   : > { %5182 = vmatprep.subr.bf16.mxu1 %v5181_v32 }
 0x158   : > { %5184 = vmatpush1.bf16.msra.mxu1 %v5183_v40 }
 0x159   : > { %5186 = vmatprep.subr.bf16.mxu1 %v5185_v47 }
 0x15c   : > { %5188 = vmatpush1.bf16.msra.mxu1 %v5187_v54 }
 0x15d   : > { %5052 = vmatprep.subr.mxu1 %v5421_v35 }
 0x21c   : > { %v811_v3 = vpop.f32.mrb[4].mxu0 }
 0x21d   : > { %v5016_v4 = vpop.f32.mrb[5].mxu0 }
 0x220   : > { %v884_v9 = vpop.f32.mrb[6].mxu0 }
 0x221   : > { %v957_v10 = vpop.f32.mrb[0].mxu1  ;;  %v5021_v11 = vpop.f32.mrb[7].mxu0 }
 0x222   : > { %v1034_v12 = vcombine.low %v811_v3, %v957_v10  ;;  %v1035_v13 = vcombine.high %v811_v3, %v957_v10  ;;  %v5026_v14 = vpop.f32.mrb[1].mxu1 }
 0x223   : > { %v5687_v14 = vld [vmem:[%s6500_s5] ss:$2 sm:$0x3] }
 0x224   : > { %v1030_v17 = vpop.f32.mrb[8].mxu0  ;;  %v1042_v22 = vrot.slane %v1034_v12, %v5619_v16  ;;  %v1049_v23 = vrot.slane %v1035_v13, %v5619_v16  ;;  %v5682_v13 = vsub.s32 0, %v5616_v8 }
 0x225   : > { %v1050_v18 = vcombine.low %v884_v9, %v1030_v17  ;;  %v1051_v19 = vcombine.high %v884_v9, %v1030_v17  ;;  %v5031_v20 = vpop.f32.mrb[9].mxu0 }
 0x226   : > { %v1211_v15 = vrot.slane %v5687_v14, %v5682_v13 }
 0x227   : > { %v1058_v24 = vrot.slane %v1050_v18, %v5619_v16  ;;  %v1065_v25 = vrot.slane %v1051_v19, %v5619_v16 }
 0x229   : > { %v1066_v26 = vcombine.low %v1042_v22, %v1058_v24  ;;  %v1067_v27 = vcombine.high %v1042_v22, %v1058_v24  ;;  %v1082_v28 = vcombine.low %v1049_v23, %v1065_v25  ;;  %v1083_v29 = vcombine.high %v1049_v23, %v1065_v25 }
 0x22b   : > { %v1074_v36 = vrot.slane %v1066_v26, %v5622_v21  ;;  %v1081_v37 = vrot.slane %v1067_v27, %v5622_v21  ;;  %v1090_v38 = vrot.slane %v1082_v28, %v5622_v21  ;;  %v1097_v39 = vrot.slane %v1083_v29, %v5622_v21 }
 0x22d   : > { %v1102_v41 = vcombine.low %v1074_v36, %v1081_v37  ;;  %v4721_v42 = vcombine.high %v1074_v36, %v1081_v37  ;;  %v1118_v43 = vcombine.low %v1090_v38, %v1097_v39  ;;  %v4722_v44 = vcombine.high %v1090_v38, %v1097_v39 }
 0x22f   : > { %v1109_v50 = vrot.slane %v1102_v41, %v5619_v16  ;;  %v1117_v51 = vrot.slane %v4721_v42, %v5619_v16  ;;  %v1125_v52 = vrot.slane %v1118_v43, %v5619_v16  ;;  %v1133_v53 = vrot.slane %v4722_v44, %v5619_v16 }
 0x231   : > { %v1135_v55 = vcombine.high %v1109_v50, %v1117_v51  ;;  %v1151_v56 = vcombine.high %v1125_v52, %v1133_v53  ;;  %v1134_v57 = vcombine.low %v1109_v50, %v1117_v51  ;;  %v1150_v58 = vcombine.low %v1125_v52, %v1133_v53 }
 0x233   : > { %v1149_v59 = vrot.slane %v1135_v55, %v5622_v21  ;;  %v1165_v60 = vrot.slane %v1151_v56, %v5622_v21  ;;  %v1142_v61 = vrot.slane %v1134_v57, %v5622_v21  ;;  %v1158_v62 = vrot.slane %v1150_v58, %v5622_v21 }
 0x235   : > { %v1168_v63 = vcombine.low %v1149_v59, %v1165_v60  ;;  %v1167_v0 = vcombine.high %v1142_v61, %v1158_v62  ;;  %v1169_v1 = vcombine.high %v1149_v59, %v1165_v60  ;;  %v1166_v2 = vcombine.low %v1142_v61, %v1158_v62 }
 0x237   : > { %1175 = vrot.lane.b32.xlu1 %v1168_v63, %s6521_s30  ;;  %1171 = vrot.lane.b32.xlu0 %v1167_v0, %s6522_s19 }
 0x23b   : > { %1179 = vrot.lane.b32.xlu1 %v1169_v1, %s6523_s1 }
 0x2a9   : > { %v1176_v3 = vpop.permute.xlu1 %1175  ;;  %v1172_v4 = vpop.permute.xlu0 %1171 }
 0x2aa   : > { %v1182_v5 = vsel %vm595_vm1, %v1166_v2, %v1172_v4 }
 0x2ab   : > { %v1184_v9 = vsel %vm1183_vm3, %v1182_v5, %v1176_v3 }
 0x2ad   : > { %v1180_v7 = vpop.permute.xlu1 %1179 }
 0x2ae   : > { %v1186_v10 = vsel %vm1185_vm4, %v1184_v9, %v1180_v7 }
 0x2af   : > { %v1188_v11 = vadd.f32 %v1187_v6, %v1186_v10 }
 0x2b1   : > { %v5675_v12 = vmul.f32 0.5, %v1188_v11 }
 0x2b3   : > { %4723 = vmatmul.mubr.msk.f32.vlgmr.msra.gmra.mrb[2].mxu1 %vm1218_vm5, %v5675_v12 }
 0x2b4   : > { %5054 = vmatprep.mubr.msk.f32.mxu1 %vm5422_vm2, %v5421_v35 }
 0x386   : > { %v1288_v17 = vpop.f32.mrb[2].mxu1 }
 0x387   : > { %v1289_v18 = vadd.f32 %v1288_v17, %v1211_v15  ;;  %v5691_v19 = vpop.f32.mrb[3].mxu1 }
 0x389   : > { %1297 = vrot.lane.b32.xlu0 %v1289_v18, %s5428_s26  ;;  %1294 = vrot.lane.b32.xlu1 %v1289_v18, %s6519_s29 }
 0x38d   : > { %1439 = vrot.lane.b32.xlu0 %v1289_v18, %s6515_s20  ;;  %1300 = vrot.lane.b32.xlu1 %v1289_v18, %s6517_s21 }
 0x3fb   : > { %v1298_v20 = vpop.permute.xlu0 %1297  ;;  %v1295_v22 = vpop.permute.xlu1 %1294 }
 0x3fc   : > { %1443 = vrot.lane.b32.xlu0 %v1298_v20, %s6515_s20  ;;  %1441 = vrot.lane.b32.xlu1 %v1295_v22, %s6515_s20  ;;  %v1303_v23 = vcombine.low %v1289_v18, %v1298_v20  ;;  %v1304_v24 = vcombine.high %v1289_v18, %v1298_v20 }
 0x3fe   : > { %v1311_v28 = vrot.slane %v1303_v23, %v5619_v16  ;;  %v1318_v29 = vrot.slane %v1304_v24, %v5619_v16 }
 0x3ff   : > { %v1301_v25 = vpop.permute.xlu1 %1300  ;;  %v1440_v61 = vpop.permute.xlu0 %1439 }
 0x400   : > { %v1319_v26 = vcombine.low %v1295_v22, %v1301_v25  ;;  %v1320_v27 = vcombine.high %v1295_v22, %v1301_v25  ;;  %1445 = vrot.lane.b32.xlu1 %v1301_v25, %s6515_s20  ;;  %s6531_s20 = smov 80  }
 0x402   : > { %v1327_v30 = vrot.slane %v1319_v26, %v5619_v16  ;;  %v1334_v31 = vrot.slane %v1320_v27, %v5619_v16 }
 0x404   : > { %v1335_v32 = vcombine.low %v1311_v28, %v1327_v30  ;;  %v1336_v33 = vcombine.high %v1311_v28, %v1327_v30  ;;  %v1351_v34 = vcombine.low %v1318_v29, %v1334_v31  ;;  %v1352_v36 = vcombine.high %v1318_v29, %v1334_v31 }
 0x406   : > { %v1343_v37 = vrot.slane %v1335_v32, %v5622_v21  ;;  %v1350_v38 = vrot.slane %v1336_v33, %v5622_v21  ;;  %v1359_v39 = vrot.slane %v1351_v34, %v5622_v21  ;;  %v1366_v40 = vrot.slane %v1352_v36, %v5622_v21 }
 0x408   : > { %v1371_v41 = vcombine.low %v1343_v37, %v1350_v38  ;;  %v4724_v42 = vcombine.high %v1343_v37, %v1350_v38  ;;  %v1387_v43 = vcombine.low %v1359_v39, %v1366_v40  ;;  %v4725_v44 = vcombine.high %v1359_v39, %v1366_v40 }
 0x40a   : > { %v1378_v45 = vrot.slane %v1371_v41, %v5619_v16  ;;  %v1386_v46 = vrot.slane %v4724_v42, %v5619_v16  ;;  %v1394_v47 = vrot.slane %v1387_v43, %v5619_v16  ;;  %v1402_v48 = vrot.slane %v4725_v44, %v5619_v16 }
 0x40c   : > { %v1403_v49 = vcombine.low %v1378_v45, %v1386_v46  ;;  %v1404_v50 = vcombine.high %v1378_v45, %v1386_v46  ;;  %v1419_v51 = vcombine.low %v1394_v47, %v1402_v48  ;;  %v1420_v52 = vcombine.high %v1394_v47, %v1402_v48 }
 0x40e   : > { %v1411_v53 = vrot.slane %v1403_v49, %v5622_v21  ;;  %v1427_v54 = vrot.slane %v1419_v51, %v5622_v21  ;;  %v1418_v55 = vrot.slane %v1404_v50, %v5622_v21  ;;  %v1434_v56 = vrot.slane %v1420_v52, %v5622_v21 }
 0x410   : > { %v1435_v57 = vcombine.low %v1411_v53, %v1427_v54  ;;  %v1436_v58 = vcombine.high %v1411_v53, %v1427_v54  ;;  %v1437_v59 = vcombine.low %v1418_v55, %v1434_v56  ;;  %v1438_v60 = vcombine.high %v1418_v55, %v1434_v56 }
 0x46e   : > { %v1444_v62 = vpop.permute.xlu0 %1443  ;;  %v1442_v63 = vpop.permute.xlu1 %1441 }
 0x46f   : > { %v1451_v0 = vcombine.low %v1440_v61, %v1444_v62  ;;  %v1452_v1 = vcombine.high %v1440_v61, %v1444_v62 }
 0x471   : > { %v1459_v5 = vrot.slane %v1451_v0, %v5619_v16  ;;  %v1466_v6 = vrot.slane %v1452_v1, %v5619_v16 }
 0x472   : > { %v1446_v2 = vpop.permute.xlu1 %1445 }
 0x473   : > { %v1467_v3 = vcombine.low %v1442_v63, %v1446_v2  ;;  %v1468_v4 = vcombine.high %v1442_v63, %v1446_v2 }
 0x475   : > { %v1475_v7 = vrot.slane %v1467_v3, %v5619_v16  ;;  %v1482_v9 = vrot.slane %v1468_v4, %v5619_v16 }
 0x477   : > { %v1483_v10 = vcombine.low %v1459_v5, %v1475_v7  ;;  %v1484_v11 = vcombine.high %v1459_v5, %v1475_v7  ;;  %v1499_v15 = vcombine.low %v1466_v6, %v1482_v9  ;;  %v1500_v17 = vcombine.high %v1466_v6, %v1482_v9 }
 0x478   : > { %v5769_v9 = vsub.s32 1, %v5616_v8 }
 0x479   : > { %v1491_v18 = vrot.slane %v1483_v10, %v5622_v21  ;;  %v1498_v20 = vrot.slane %v1484_v11, %v5622_v21  ;;  %v1507_v22 = vrot.slane %v1499_v15, %v5622_v21  ;;  %v1514_v23 = vrot.slane %v1500_v17, %v5622_v21 }
 0x47a   : > { %v1215_v10 = vrot.slane %v5687_v14, %v5769_v9 }
 0x47b   : > { %v1519_v24 = vcombine.low %v1491_v18, %v1498_v20  ;;  %v4726_v25 = vcombine.high %v1491_v18, %v1498_v20  ;;  %v1535_v26 = vcombine.low %v1507_v22, %v1514_v23  ;;  %v4727_v27 = vcombine.high %v1507_v22, %v1514_v23 }
 0x47c   : > { %v1291_v11 = vadd.f32 %v5691_v19, %v1215_v10 }
 0x47d   : > { %v1526_v28 = vrot.slane %v1519_v24, %v5619_v16  ;;  %v1534_v29 = vrot.slane %v4726_v25, %v5619_v16  ;;  %v1542_v30 = vrot.slane %v1535_v26, %v5619_v16  ;;  %v1550_v31 = vrot.slane %v4727_v27, %v5619_v16 }
 0x47f   : > { %v1551_v32 = vcombine.low %v1526_v28, %v1534_v29  ;;  %v1567_v33 = vcombine.low %v1542_v30, %v1550_v31  ;;  %v1552_v37 = vcombine.high %v1526_v28, %v1534_v29  ;;  %v1568_v38 = vcombine.high %v1542_v30, %v1550_v31 }
 0x481   : > { %v1559_v34 = vrot.slane %v1551_v32, %v5622_v21  ;;  %v1575_v36 = vrot.slane %v1567_v33, %v5622_v21  ;;  %v1566_v41 = vrot.slane %v1552_v37, %v5622_v21  ;;  %v1582_v42 = vrot.slane %v1568_v38, %v5622_v21 }
 0x483   : > { %v1583_v39 = vcombine.low %v1559_v34, %v1575_v36  ;;  %v1584_v40 = vcombine.high %v1559_v34, %v1575_v36  ;;  %v1585_v43 = vcombine.low %v1566_v41, %v1582_v42  ;;  %v1586_v44 = vcombine.high %v1566_v41, %v1582_v42 }
 0x485   : > { %5033 = vmatpush3.xpose.msk.msra.mxu0 %vm595_vm1, %v1583_v39 }
 0x486   : > { %5037 = vmatprep.subr.mxu0 %v5421_v35 }
 0x488   : > { %5035 = vmatmul.mubr.msk.f32.vlgmr.msra.gmra.mrb[10].mxu0 %vm595_vm1, %v1435_v57 }
 0x489   : > { %5038 = vmatpush3.xpose.msk.msra.mxu0 %vm595_vm1, %v1584_v40  ;;  %5039 = vmatprep.mubr.msk.f32.mxu0 %vm5422_vm2, %v5421_v35 }
 0x48a   : > { %5042 = vmatprep.subr.mxu0 %v5421_v35 }
 0x48c   : > { %5040 = vmatmul.mubr.msk.f32.vlgmr.msra.gmra.mrb[12].mxu0 %vm595_vm1, %v1436_v58 }
 0x48d   : > { %5043 = vmatpush3.xpose.msk.msra.mxu0 %vm595_vm1, %v1585_v43  ;;  %5044 = vmatprep.mubr.msk.f32.mxu0 %vm5422_vm2, %v5421_v35 }
 0x48e   : > { %5047 = vmatprep.subr.mxu0 %v5421_v35 }
 0x490   : > { %5045 = vmatmul.mubr.msk.f32.vlgmr.msra.gmra.mrb[14].mxu0 %vm595_vm1, %v1437_v59 }
 0x491   : > { %5048 = vmatpush3.xpose.msk.msra.mxu0 %vm595_vm1, %v1586_v44  ;;  %5049 = vmatprep.mubr.msk.f32.mxu0 %vm5422_vm2, %v5421_v35 }
 0x492   : > { %5057 = vmatprep.subr.mxu0 %v5421_v35 }
 0x494   : > { %5050 = vmatmul.mubr.msk.f32.vlgmr.msra.gmra.mrb[16].mxu0 %vm595_vm1, %v1438_v60 }
 0x495   : > { %5059 = vmatprep.mubr.msk.f32.mxu0 %vm5422_vm2, %v5421_v35 }
 0x55b   : > { %v1805_v45 = vpop.f32.mrb[10].mxu0 }
 0x55c   : > { %v5036_v46 = vpop.f32.mrb[11].mxu0  ;;  %v2037_v47 = vsel %vm697_vm0, %v1805_v45, -inf }
 0x55d   : > { %2038 = vmax.xlane.f32.xlu0 %v2037_v47 }
 0x55f   : > { %v1881_v48 = vpop.f32.mrb[12].mxu0 }
 0x560   : > { %v5041_v49 = vpop.f32.mrb[13].mxu0  ;;  %v2040_v50 = vsel %vm697_vm0, %v1881_v48, -inf }
 0x561   : > { %2041 = vmax.xlane.f32.xlu1 %v2040_v50 }
 0x563   : > { %v1957_v51 = vpop.f32.mrb[14].mxu0 }
 0x564   : > { %v5046_v52 = vpop.f32.mrb[15].mxu0  ;;  %v2043_v53 = vsel %vm697_vm0, %v1957_v51, -inf }
 0x565   : > { %2044 = vmax.xlane.f32.xlu0 %v2043_v53 }
 0x567   : > { %v2033_v54 = vpop.f32.mrb[16].mxu0 }
 0x568   : > { %v5051_v55 = vpop.f32.mrb[17].mxu0  ;;  %v2046_v56 = vsel %vm697_vm0, %v2033_v54, -inf }
 0x569   : > { %2047 = vmax.xlane.f32.xlu0 %v2046_v56 }
 0x5ea   : > { %v2039_v57 = vpop.xlane.xlu0 %2038 }
 0x5eb   : > { %v2049_v58 = vsub.f32 %v1805_v45, %v2039_v57 }
 0x5ed   : > { %v2053_v59 = vmul.f32 1.442695, %v2049_v58 }
 0x5ee   : > { %v2042_v60 = vpop.xlane.xlu1 %2041 }
 0x5ef   : > { %5373 = vpow2.f32 %v2053_v59  ;;  %v2050_v61 = vsub.f32 %v1881_v48, %v2042_v60 }
 0x5f1   : > { %v2055_v62 = vmul.f32 1.442695, %v2050_v61 }
 0x5f2   : > { %v2045_v63 = vpop.xlane.xlu0 %2044 }
 0x5f3   : > { %5375 = vpow2.f32 %v2055_v62  ;;  %v2051_v0 = vsub.f32 %v1957_v51, %v2045_v63 }
 0x5f5   : > { %v2057_v1 = vmul.f32 1.442695, %v2051_v0 }
 0x5f6   : > { %v2048_v15 = vpop.xlane.xlu0 %2047 }
 0x5f7   : > { %5377 = vpow2.f32 %v2057_v1  ;;  %v2052_v17 = vsub.f32 %v2033_v54, %v2048_v15 }
 0x5f9   : > { %v5756_v2 = vpop.eup %5373  ;;  %v2059_v18 = vmul.f32 1.442695, %v2052_v17  ;;  %v5432_v17 = vmov 0.0|0.0  }
 0x5fa   : > { %v2061_v3 = vsel %vm697_vm0, %v5756_v2, 0.0 }
 0x5fb   : > { %2062 = vadd.xlane.f32.xlu0 %v2061_v3  ;;  %5379 = vpow2.f32 %v2059_v18 }
 0x5fd   : > { %v5760_v4 = vpop.eup %5375 }
 0x5fe   : > { %v2064_v5 = vsel %vm697_vm0, %v5760_v4, 0.0 }
 0x5ff   : > { %2065 = vadd.xlane.f32.xlu1 %v2064_v5 }
 0x601   : > { %v5764_v6 = vpop.eup %5377 }
 0x602   : > { %v2067_v7 = vsel %vm697_vm0, %v5764_v6, 0.0 }
 0x603   : > { %2068 = vadd.xlane.f32.xlu0 %v2067_v7 }
 0x605   : > { %v5776_v20 = vpop.eup %5379 }
 0x606   : > { %v2070_v22 = vsel %vm697_vm0, %v5776_v20, 0.0 }
 0x610   : > { %1591 = vrot.lane.b32.xlu1 %v1291_v11, %s5428_s26 }
 0x619   : > { %1588 = vrot.lane.b32.xlu0 %v1291_v11, %s6519_s29  ;;  %s6530_s29 = smov 112  }
 0x634   : > { %2071 = vadd.xlane.f32.xlu1 %v2070_v22 }
 0x645   : > { %1594 = vrot.lane.b32.xlu1 %v1291_v11, %s6517_s21  ;;  %s6532_s21 = smov 64  }
 0x688   : > { %v2063_v14 = vpop.xlane.xlu0 %2062 }
 0x689   : > { %5381 = vrcp.f32 %v2063_v14  ;;  %v2529_v14 = vld [vmem:[%s6501_s6 + $0x28] sm:$0xff] }
 0x68c   : > { %v2066_v8 = vpop.xlane.xlu1 %2065 }
 0x68d   : > { %5383 = vrcp.f32 %v2066_v8  ;;  %v2528_v8 = vld [vmem:[%s6501_s6 + $0x20] sm:$0xff] }
 0x690   : > { %v1592_v23 = vpop.permute.xlu1 %1591  ;;  %v2069_v19 = vpop.xlane.xlu0 %2068 }
 0x691   : > { %v1597_v25 = vcombine.low %v1291_v11, %v1592_v23  ;;  %v1598_v26 = vcombine.high %v1291_v11, %v1592_v23  ;;  %5385 = vrcp.f32 %v2069_v19  ;;  %v5196_v23 = vpack.c.bf16 %v2529_v14, %v2528_v8 }
 0x693   : > { %v1605_v31 = vrot.slane %v1597_v25, %v5619_v16  ;;  %v1612_v32 = vrot.slane %v1598_v26, %v5619_v16  ;;  %v5382_v52 = vpop.eup %5381 }
 0x694   : > { %v1589_v27 = vpop.permute.xlu0 %1588  ;;  %v2077_v3 = vmul.f32 %v5382_v52, %v5756_v2  ;;  %v2524_v2 = vld [vmem:[%s6501_s6] sm:$0xff] }
 0x697   : > { %v5384_v57 = vpop.eup %5383 }
 0x698   : > { %v2078_v5 = vmul.f32 %v5384_v57, %v5760_v4  ;;  %v2525_v4 = vld [vmem:[%s6501_s6 + $0x8] sm:$0xff] }
 0x699   : > { %v5190_v18 = vpack.c.bf16 %v2525_v4, %v2524_v2 }
 0x69b   : > { %v5386_v60 = vpop.eup %5385 }
 0x69c   : > { %v2079_v11 = vmul.f32 %v5386_v60, %v5764_v6  ;;  %v2526_v6 = vld [vmem:[%s6501_s6 + $0x10] sm:$0xff] }
 0x6c1   : > { %v2072_v24 = vpop.xlane.xlu1 %2071 }
 0x6c2   : > { %5387 = vrcp.f32 %v2072_v24 }
 0x6c5   : > { %v1595_v28 = vpop.permute.xlu1 %1594 }
 0x6c6   : > { %v1613_v29 = vcombine.low %v1589_v27, %v1595_v28  ;;  %v1614_v30 = vcombine.high %v1589_v27, %v1595_v28 }
 0x6c8   : > { %v1621_v33 = vrot.slane %v1613_v29, %v5619_v16  ;;  %v1628_v34 = vrot.slane %v1614_v30, %v5619_v16 }
 0x6ca   : > { %v1629_v36 = vcombine.low %v1605_v31, %v1621_v33  ;;  %v1630_v37 = vcombine.high %v1605_v31, %v1621_v33  ;;  %v1645_v38 = vcombine.low %v1612_v32, %v1628_v34  ;;  %v1646_v39 = vcombine.high %v1612_v32, %v1628_v34 }
 0x6cc   : > { %v1637_v40 = vrot.slane %v1629_v36, %v5622_v21  ;;  %v1644_v41 = vrot.slane %v1630_v37, %v5622_v21  ;;  %v1653_v42 = vrot.slane %v1645_v38, %v5622_v21  ;;  %v1660_v43 = vrot.slane %v1646_v39, %v5622_v21  ;;  %v5388_v1 = vpop.eup %5387 }
 0x6cd   : > { %v2080_v15 = vmul.f32 %v5388_v1, %v5776_v20  ;;  %v2527_v20 = vld [vmem:[%s6501_s6 + $0x18] sm:$0xff] }
 0x6ce   : > { %v1665_v44 = vcombine.low %v1637_v40, %v1644_v41  ;;  %v4728_v45 = vcombine.high %v1637_v40, %v1644_v41  ;;  %v1681_v46 = vcombine.low %v1653_v42, %v1660_v43  ;;  %v4729_v47 = vcombine.high %v1653_v42, %v1660_v43 }
 0x6cf   : > { %v5193_v22 = vpack.c.bf16 %v2527_v20, %v2526_v6 }
 0x6d0   : > { %v1672_v48 = vrot.slane %v1665_v44, %v5619_v16  ;;  %v1680_v49 = vrot.slane %v4728_v45, %v5619_v16  ;;  %v1688_v50 = vrot.slane %v1681_v46, %v5619_v16  ;;  %v1696_v51 = vrot.slane %v4729_v47, %v5619_v16  ;;  %v2530_v44 = vld [vmem:[%s6501_s6 + $0x30] sm:$0xff]  ;;  %v2531_v45 = vld [vmem:[%s6501_s6 + $0x38] sm:$0xff] }
 0x6d2   : > { %v1697_v53 = vcombine.low %v1672_v48, %v1680_v49  ;;  %v1713_v54 = vcombine.low %v1688_v50, %v1696_v51  ;;  %v1698_v55 = vcombine.high %v1672_v48, %v1680_v49  ;;  %v1714_v56 = vcombine.high %v1688_v50, %v1696_v51 }
 0x6d3   : > { %v5199_v50 = vpack.c.bf16 %v2531_v45, %v2530_v44  ;;  %v2645_v45 = vld [vmem:[%s6503_s8 + $0x40] sm:$0xff] }
 0x6d4   : > { %v1705_v58 = vrot.slane %v1697_v53, %v5622_v21  ;;  %v1721_v59 = vrot.slane %v1713_v54, %v5622_v21  ;;  %v1712_v61 = vrot.slane %v1698_v55, %v5622_v21  ;;  %v1728_v62 = vrot.slane %v1714_v56, %v5622_v21 }
 0x6d6   : > { %v1729_v63 = vcombine.low %v1705_v58, %v1721_v59  ;;  %v1730_v0 = vcombine.high %v1705_v58, %v1721_v59  ;;  %v1731_v7 = vcombine.low %v1712_v61, %v1728_v62  ;;  %v1732_v10 = vcombine.high %v1712_v61, %v1728_v62 }
 0x6d8   : > { %5053 = vmatpush3.msra.mxu1 %v1729_v63  ;;  %5058 = vmatpush3.msra.mxu0 %v1730_v0 }
 0x6d9   : > { %5055 = vmatmul.mubr.msk.f32.vlgmr.msra.gmra.mrb[4].mxu1 %vm697_vm0, %v2077_v3  ;;  %5060 = vmatmul.mubr.msk.f32.vlgmr.msra.gmra.mrb[18].mxu0 %vm697_vm0, %v2078_v5 }
 0x6da   : > { %5062 = vmatprep.subr.mxu1 %v5421_v35  ;;  %5067 = vmatprep.subr.mxu0 %v5421_v35 }
 0x6db   : > { %5063 = vmatpush3.msra.mxu1 %v1731_v7  ;;  %5068 = vmatpush3.msra.mxu0 %v1732_v10 }
 0x6dc   : > { %5064 = vmatprep.mubr.msk.f32.mxu1 %vm5422_vm2, %v5421_v35  ;;  %5069 = vmatprep.mubr.msk.f32.mxu0 %vm5422_vm2, %v5421_v35 }
 0x6dd   : > { %5065 = vmatmul.mubr.msk.f32.vlgmr.msra.gmra.mrb[6].mxu1 %vm697_vm0, %v2079_v11  ;;  %5070 = vmatmul.mubr.msk.f32.vlgmr.msra.gmra.mrb[20].mxu0 %vm697_vm0, %v2080_v15 }
 0x6de   : > { %5088 = vmatprep.mubr.msk.f32.mxu1 %vm5422_vm2, %v5421_v35  ;;  %2732 = vmatprep.mubr.f32.mxu0 %v5421_v35 }
 0x6df   : > { %5189 = vmatprep.subr.bf16.mxu1 %v5432_v17 }
 0x6e0   : > { %5191 = vmatpush3.bf16.msra.mxu1 %v5190_v18 }
 0x6e1   : > { %5192 = vmatprep.subr.bf16.mxu1 %v5432_v17 }
 0x6e4   : > { %5194 = vmatpush3.bf16.msra.mxu1 %v5193_v22  ;;  %v4744_v22 = vld [vmem:[%s6502_s7] ss:$0 sm:$0xff] }
 0x6e5   : > { %5195 = vmatprep.subr.bf16.mxu1 %v5432_v17 }
 0x6e8   : > { %5197 = vmatpush3.bf16.msra.mxu1 %v5196_v23 }
 0x6e9   : > { %5198 = vmatprep.subr.bf16.mxu1 %v5432_v17 }
 0x6ec   : > { %5200 = vmatpush3.bf16.msra.mxu1 %v5199_v50  ;;  %v2649_v50 = vld [vmem:[%s6503_s8 + $0x60] sm:$0xff] }
 0x7ac   : > { %v2150_v19 = vpop.f32.mrb[4].mxu1  ;;  %v2223_v24 = vpop.f32.mrb[18].mxu0 }
 0x7ad   : > { %v5056_v25 = vpop.f32.mrb[5].mxu1  ;;  %v5061_v26 = vpop.f32.mrb[19].mxu0 }
 0x7b0   : > { %v2296_v27 = vpop.f32.mrb[6].mxu1  ;;  %v2369_v28 = vpop.f32.mrb[20].mxu0 }
 0x7b1   : > { %v2373_v29 = vcombine.low %v2150_v19, %v2296_v27  ;;  %v2374_v30 = vcombine.high %v2150_v19, %v2296_v27  ;;  %v2389_v31 = vcombine.low %v2223_v24, %v2369_v28  ;;  %v2390_v32 = vcombine.high %v2223_v24, %v2369_v28  ;;  %v5066_v33 = vpop.f32.mrb[7].mxu1  ;;  %v5071_v34 = vpop.f32.mrb[21].mxu0 }
 0x7b2   : > { %v2639_v33 = vld [vmem:[%s6503_s8 + $0x10] sm:$0xff] }
 0x7b3   : > { %v2381_v36 = vrot.slane %v2373_v29, %v5619_v16  ;;  %v2388_v37 = vrot.slane %v2374_v30, %v5619_v16  ;;  %v2397_v38 = vrot.slane %v2389_v31, %v5619_v16  ;;  %v2404_v39 = vrot.slane %v2390_v32, %v5619_v16  ;;  %v2638_v30 = vld [vmem:[%s6503_s8 + $0x8] sm:$0xff]  ;;  %v2637_v32 = vld [vmem:[%s6503_s8] sm:$0xff] }
 0x7b4   : > { %v5203_v34 = vpack.c.bf16 %v2639_v33, %v2637_v32  ;;  %v2770_v32 = vld [vmem:[%s6505_s10 + $0xe8] sm:$0xff] }
 0x7b5   : > { %v2405_v40 = vcombine.low %v2381_v36, %v2397_v38  ;;  %v2406_v41 = vcombine.high %v2381_v36, %v2397_v38  ;;  %v2421_v42 = vcombine.low %v2388_v37, %v2404_v39  ;;  %v2422_v43 = vcombine.high %v2388_v37, %v2404_v39  ;;  %v2642_v36 = vld [vmem:[%s6503_s8 + $0x28] sm:$0xff]  ;;  %v2644_v37 = vld [vmem:[%s6503_s8 + $0x38] sm:$0xff]  ;;  %v2641_v39 = vld [vmem:[%s6503_s8 + $0x20] sm:$0xff] }
 0x7b6   : > { %v5205_v38 = vpack.c.bf16 %v2644_v37, %v2642_v36 }
 0x7b7   : > { %v2413_v46 = vrot.slane %v2405_v40, %v5622_v21  ;;  %v2420_v47 = vrot.slane %v2406_v41, %v5622_v21  ;;  %v2429_v48 = vrot.slane %v2421_v42, %v5622_v21  ;;  %v2436_v49 = vrot.slane %v2422_v43, %v5622_v21  ;;  %v2643_v40 = vld [vmem:[%s6503_s8 + $0x30] sm:$0xff]  ;;  %v2646_v42 = vld [vmem:[%s6503_s8 + $0x48] sm:$0xff]  ;;  %v2648_v43 = vld [vmem:[%s6503_s8 + $0x58] sm:$0xff] }
 0x7b8   : > { %v5207_v41 = vpack.c.bf16 %v2643_v40, %v2641_v39  ;;  %v5209_v44 = vpack.c.bf16 %v2648_v43, %v2646_v42  ;;  %v4746_v40 = vld [vmem:[%s6507_s12] ss:$0 sm:$0xff] }
 0x7b9   : > { %v2441_v51 = vcombine.low %v2413_v46, %v2420_v47  ;;  %v4742_v52 = vcombine.high %v2413_v46, %v2420_v47  ;;  %v2457_v53 = vcombine.low %v2429_v48, %v2436_v49  ;;  %v4743_v54 = vcombine.high %v2429_v48, %v2436_v49  ;;  %v2647_v46 = vld [vmem:[%s6503_s8 + $0x50] sm:$0xff]  ;;  %v2650_v48 = vld [vmem:[%s6503_s8 + $0x68] sm:$0xff]  ;;  %v2652_v49 = vld [vmem:[%s6503_s8 + $0x78] sm:$0xff] }
 0x7ba   : > { %v5211_v47 = vpack.c.bf16 %v2647_v46, %v2645_v45  ;;  %v4747_v42 = vld [vmem:[%s6508_s13] ss:$0 sm:$0xff]  ;;  %v2754_v46 = vld [vmem:[%s6505_s10 + $0x68] sm:$0xff] }
 0x7bb   : > { %v2448_v55 = vrot.slane %v2441_v51, %v5619_v16  ;;  %v2456_v56 = vrot.slane %v4742_v52, %v5619_v16  ;;  %v2464_v57 = vrot.slane %v2457_v53, %v5619_v16  ;;  %v2472_v58 = vrot.slane %v4743_v54, %v5619_v16  ;;  %v2651_v52 = vld [vmem:[%s6503_s8 + $0x70] sm:$0xff]  ;;  %v2757_v54 = vld [vmem:[%s6505_s10 + $0x80] sm:$0xff] }
 0x7bc   : > { %v5213_v51 = vpack.c.bf16 %v2652_v49, %v2650_v48  ;;  %v5215_v53 = vpack.c.bf16 %v2651_v52, %v2649_v50  ;;  %v2753_v45 = vld [vmem:[%s6505_s10 + $0x60] sm:$0xff]  ;;  %v2772_v48 = vld [vmem:[%s6505_s10 + $0xf8] sm:$0xff]  ;;  %v2755_v50 = vld [vmem:[%s6505_s10 + $0x70] sm:$0xff] }
 0x7bd   : > { %v2474_v59 = vcombine.high %v2448_v55, %v2456_v56  ;;  %v2490_v60 = vcombine.high %v2464_v57, %v2472_v58  ;;  %v2473_v61 = vcombine.low %v2448_v55, %v2456_v56  ;;  %v2489_v62 = vcombine.low %v2464_v57, %v2472_v58  ;;  %v2758_v55 = vld [vmem:[%s6505_s10 + $0x88] sm:$0xff]  ;;  %v2741_v56 = vld [vmem:[%s6505_s10] sm:$0xff] }
 0x7be   : > { %v5217_v57 = vpack.c.bf16 %v2758_v55, %v2757_v54  ;;  %v2742_v58 = vld [vmem:[%s6505_s10 + $0x8] sm:$0xff] }
 0x7bf   : > { %v2488_v63 = vrot.slane %v2474_v59, %v5622_v21  ;;  %v2504_v0 = vrot.slane %v2490_v60, %v5622_v21  ;;  %v2481_v1 = vrot.slane %v2473_v61, %v5622_v21  ;;  %v2497_v3 = vrot.slane %v2489_v62, %v5622_v21  ;;  %v2759_v59 = vld [vmem:[%s6505_s10 + $0x90] sm:$0xff]  ;;  %v2760_v60 = vld [vmem:[%s6505_s10 + $0x98] sm:$0xff] }
 0x7c0   : > { %v5219_v61 = vpack.c.bf16 %v2742_v58, %v2741_v56  ;;  %v5221_v62 = vpack.c.bf16 %v2760_v60, %v2759_v59  ;;  %5218 = vmatprep.subr.bf16.mxu1 %v5217_v57 }
 0x7c1   : > { %v2507_v5 = vcombine.low %v2488_v63, %v2504_v0  ;;  %v2506_v7 = vcombine.high %v2481_v1, %v2497_v3  ;;  %v2508_v10 = vcombine.high %v2488_v63, %v2504_v0  ;;  %v2505_v11 = vcombine.low %v2481_v1, %v2497_v3  ;;  %v2743_v63 = vld [vmem:[%s6505_s10 + $0x10] sm:$0xff]  ;;  %v2744_v0 = vld [vmem:[%s6505_s10 + $0x18] sm:$0xff]  ;;  %v2761_v1 = vld [vmem:[%s6505_s10 + $0xa0] sm:$0xff] }
 0x7c2   : > { %v2762_v3 = vld [vmem:[%s6505_s10 + $0xa8] sm:$0xff] }
 0x7c3   : > { %2514 = vrot.lane.b32.xlu0 %v2507_v5, %s6521_s30  ;;  %2510 = vrot.lane.b32.xlu1 %v2506_v7, %s6522_s19  ;;  %v5223_v5 = vpack.c.bf16 %v2744_v0, %v2743_v63  ;;  %v5225_v7 = vpack.c.bf16 %v2762_v3, %v2761_v1  ;;  %v4749_v63 = vld [vmem:[%s6506_s11] ss:$0 sm:$0xff]  ;;  %s6533_s30 = smov 48   ;;  %s6534_s19 = smov 16  }
 0x7c7   : > { %2518 = vrot.lane.b32.xlu1 %v2508_v10, %s6523_s1  ;;  %v2745_v10 = vld [vmem:[%s6505_s10 + $0x20] sm:$0xff] }
 0x835   : > { %v2511_v15 = vpop.permute.xlu1 %2510  ;;  %v2515_v2 = vpop.permute.xlu0 %2514 }
 0x836   : > { %v2521_v4 = vsel %vm595_vm1, %v2505_v11, %v2511_v15  ;;  %v2746_v11 = vld [vmem:[%s6505_s10 + $0x28] sm:$0xff]  ;;  %v2763_v15 = vld [vmem:[%s6505_s10 + $0xb0] sm:$0xff] }
 0x837   : > { %v2522_v18 = vsel %vm1183_vm3, %v2521_v4, %v2515_v2  ;;  %v2764_v2 = vld [vmem:[%s6505_s10 + $0xb8] sm:$0xff]  ;;  %v5227_v4 = vpack.c.bf16 %v2746_v11, %v2745_v10 }
 0x839   : > { %v2519_v6 = vpop.permute.xlu1 %2518 }
 0x83a   : > { %v2523_v20 = vsel %vm1185_vm4, %v2522_v18, %v2519_v6  ;;  %v5229_v6 = vpack.c.bf16 %v2764_v2, %v2763_v15  ;;  %v2747_v18 = vld [vmem:[%s6505_s10 + $0x30] sm:$0xff] }
 0x83b   : > { %5089 = vmatmul.mubr.msk.f32.vlgmr.msra.gmra.mrb[8].mxu1 %vm1218_vm5, %v2523_v20  ;;  %v2748_v20 = vld [vmem:[%s6505_s10 + $0x38] sm:$0xff] }
 0x83c   : > { %5220 = vmatpush3.bf16.msra.mxu1 %v5219_v61 }
 0x83d   : > { %5222 = vmatprep.subr.bf16.mxu1 %v5221_v62 }
 0x840   : > { %5224 = vmatpush3.bf16.msra.mxu1 %v5223_v5 }
 0x841   : > { %5226 = vmatprep.subr.bf16.mxu1 %v5225_v7 }
 0x844   : > { %5228 = vmatpush3.bf16.msra.mxu1 %v5227_v4 }
 0x845   : > { %5230 = vmatprep.subr.bf16.mxu1 %v5229_v6  ;;  %v4753_v6 = vld [vmem:[%s6499_s4 + $0x88] sm:$0xff] }
 0x90e   : > { %v2606_v8 = vpop.f32.mrb[8].mxu1 }
 0x90f   : > { %v2607_v14 = vadd.f32 %v4744_v22, %v2606_v8  ;;  %v5090_v23 = vpop.f32.mrb[9].mxu1  ;;  %v2765_v22 = vld [vmem:[%s6505_s10 + $0xc0] sm:$0xff]  ;;  %v2766_v8 = vld [vmem:[%s6505_s10 + $0xc8] sm:$0xff] }
 0x910   : > { %v5233_v23 = vpack.c.bf16 %v2766_v8, %v2765_v22  ;;  %v4752_v22 = vld [vmem:[%s6499_s4 + $0x80] sm:$0xff]  ;;  %v4754_v8 = vld [vmem:[%s6499_s4 + $0x90] sm:$0xff] }
 0x911   : > { %v2610_v19 = vadd.f32 %v2607_v14, %v5675_v12  ;;  %v2640_v12 = vld [vmem:[%s6503_s8 + $0x18] sm:$0xff]  ;;  %v5231_v14 = vpack.c.bf16 %v2748_v20, %v2747_v18 }
 0x912   : > { %v5201_v31 = vpack.c.bf16 %v2640_v12, %v2638_v30  ;;  %v2751_v30 = vld [vmem:[%s6505_s10 + $0x50] sm:$0xff]  ;;  %v2752_v12 = vld [vmem:[%s6505_s10 + $0x58] sm:$0xff] }
 0x913   : > { %v2613_v24 = vsel %vm1218_vm5, %v2610_v19, 0.0  ;;  %5232 = vmatpush3.bf16.msra.mxu1 %v5231_v14  ;;  %v5239_v33 = vpack.c.bf16 %v2752_v12, %v2751_v30  ;;  %v4755_v18 = vld [vmem:[%s6499_s4 + $0x98] sm:$0xff]  ;;  %v5251_v14 = vpack.c.bf16 %v4754_v8, %v4752_v22 }
 0x914   : > { %2614 = vadd.xlane.f32.xlu0 %v2613_v24  ;;  %5202 = vmatprep.subr.bf16.mxu0 %v5201_v31  ;;  %v2750_v24 = vld [vmem:[%s6505_s10 + $0x48] sm:$0xff]  ;;  %v2769_v31 = vld [vmem:[%s6505_s10 + $0xe0] sm:$0xff]  ;;  %v5249_v20 = vpack.c.bf16 %v4755_v18, %v4753_v6  ;;  %v4763_v30 = vld [vmem:[%s6499_s4 + $0xd8] sm:$0xff] }
 0x915   : > { %5204 = vmatpush1.bf16.msra.mxu0 %v5203_v34  ;;  %5234 = vmatprep.subr.bf16.mxu1 %v5233_v23  ;;  %v5241_v34 = vpack.c.bf16 %v2770_v32, %v2769_v31  ;;  %v4757_v23 = vld [vmem:[%s6499_s4 + $0xa8] sm:$0xff]  ;;  %v4760_v31 = vld [vmem:[%s6499_s4 + $0xc0] sm:$0xff]  ;;  %v4762_v32 = vld [vmem:[%s6499_s4 + $0xd0] sm:$0xff] }
 0x916   : > { %5206 = vmatprep.subr.bf16.mxu0 %v5205_v38 }
 0x919   : > { %5208 = vmatpush1.bf16.msra.mxu0 %v5207_v41 }
 0x91a   : > { %5210 = vmatprep.subr.bf16.mxu0 %v5209_v44 }
 0x91d   : > { %5212 = vmatpush1.bf16.msra.mxu0 %v5211_v47  ;;  %v5243_v47 = vpack.c.bf16 %v2754_v46, %v2753_v45  ;;  %v4750_v45 = vld [vmem:[%s6509_s14] ss:$0 sm:$0xff] }
 0x91e   : > { %5214 = vmatprep.subr.bf16.mxu0 %v5213_v51  ;;  %v2756_v51 = vld [vmem:[%s6505_s10 + $0x78] sm:$0xff] }
 0x91f   : > { %v5247_v52 = vpack.c.bf16 %v2756_v51, %v2755_v50 }
 0x921   : > { %5216 = vmatpush1.bf16.msra.mxu0 %v5215_v53  ;;  %v2653_v53 = vld [vmem:[%s6504_s9] ss:$2 sm:$0x3] }
 0x922   : > { %v2658_v54 = vrot.slane %v2653_v53, %v5682_v13  ;;  %v2662_v55 = vrot.slane %v2653_v53, %v5769_v9  ;;  %5250 = vmatprep.subr.bf16.mxu0 %v5249_v20 }
 0x9a1   : > { %v2615_v25 = vpop.xlane.xlu0 %2614 }
 0x9a2   : > { %v2617_v26 = vmul.f32 0.015625, %v2615_v25  ;;  %v2767_v25 = vld [vmem:[%s6505_s10 + $0xd0] sm:$0xff] }
 0x9a4   : > { %v5870_v27 = vsub.f32 %v2610_v19, %v2617_v26  ;;  %v2749_v19 = vld [vmem:[%s6505_s10 + $0x40] sm:$0xff]  ;;  %v2768_v26 = vld [vmem:[%s6505_s10 + $0xd8] sm:$0xff] }
 0x9a6   : > { %v2619_v28 = vmul.f32 %v5870_v27, %v5870_v27 }
 0x9a8   : > { %v2620_v29 = vsel %vm1218_vm5, %v2619_v28, 0.0  ;;  %v5235_v28 = vpack.c.bf16 %v2750_v24, %v2749_v19  ;;  %v4759_v19 = vld [vmem:[%s6499_s4 + $0xb8] sm:$0xff] }
 0x9a9   : > { %2621 = vadd.xlane.f32.xlu1 %v2620_v29  ;;  %v5237_v29 = vpack.c.bf16 %v2768_v26, %v2767_v25  ;;  %v5253_v24 = vpack.c.bf16 %v4759_v19, %v4757_v23  ;;  %v4756_v25 = vld [vmem:[%s6499_s4 + $0xa0] sm:$0xff]  ;;  %v4758_v26 = vld [vmem:[%s6499_s4 + $0xb0] sm:$0xff] }
 0x9aa   : > { %5236 = vmatpush3.bf16.msra.mxu1 %v5235_v28  ;;  %v5255_v28 = vpack.c.bf16 %v4758_v26, %v4756_v25 }
 0x9ab   : > { %5238 = vmatprep.subr.bf16.mxu1 %v5237_v29  ;;  %v4761_v29 = vld [vmem:[%s6499_s4 + $0xc8] sm:$0xff] }
 0x9ac   : > { %v5257_v12 = vpack.c.bf16 %v4763_v30, %v4761_v29 }
 0x9ae   : > { %5240 = vmatpush3.bf16.msra.mxu1 %v5239_v33  ;;  %v5259_v33 = vpack.c.bf16 %v4762_v32, %v4760_v31 }
 0x9af   : > { %5242 = vmatprep.subr.bf16.mxu1 %v5241_v34  ;;  %v4765_v34 = vld [vmem:[%s6499_s4 + $0xe8] sm:$0xff] }
 0x9b2   : > { %5244 = vmatpush3.bf16.msra.mxu1 %v5243_v47  ;;  %v4751_v47 = vld [vmem:[%s6510_s15] ss:$0 sm:$0xff] }
 0xa36   : > { %v2622_v36 = vpop.xlane.xlu1 %2621 }
 0xa37   : > { %v2623_v37 = vmul.f32 0.015625, %v2622_v36  ;;  %v4767_v36 = vld [vmem:[%s6499_s4 + $0xf8] sm:$0xff] }
 0xa39   : > { %v2624_v38 = vadd.f32 1e-05, %v2623_v37  ;;  %v4764_v37 = vld [vmem:[%s6499_s4 + $0xe0] sm:$0xff] }
 0xa3b   : > { %5389 = vrsqrt.f32 %v2624_v38  ;;  %v5261_v38 = vpack.c.bf16 %v4767_v36, %v4765_v34 }
 0xa45   : > { %v5390_v39 = vpop.eup %5389 }
 0xa46   : > { %v2626_v41 = vmul.f32 %v5390_v39, %v5870_v27  ;;  %v2771_v27 = vld [vmem:[%s6505_s10 + $0xf0] sm:$0xff] }
 0xa47   : > { %v5245_v49 = vpack.c.bf16 %v2772_v48, %v2771_v27  ;;  %v4766_v39 = vld [vmem:[%s6499_s4 + $0xf0] sm:$0xff] }
 0xa48   : > { %v2631_v43 = vmul.f32 %v4746_v40, %v2626_v41  ;;  %v5263_v40 = vpack.c.bf16 %v4766_v39, %v4764_v37 }
 0xa49   : > { %5246 = vmatprep.subr.bf16.mxu1 %v5245_v49  ;;  %v6105_v49 = vld [vmem:[%s6500_s5 + $0x1] ss:$2 sm:$0x3] }
 0xa4a   : > { %v2636_v44 = vadd.f32 %v4747_v42, %v2631_v43  ;;  %5248 = vmatpush3.bf16.msra.mxu1 %v5247_v52  ;;  %v2897_v50 = vrot.slane %v6105_v49, %v5682_v13 }
 0xa4b   : > { %5111 = vmatprep.subr.mxu1 %v5421_v35 }
 0xa4c   : > { %4748 = vmatmul.mubr.msk.f32.vlgmr.msra.gmra.mrb[22].mxu0 %vm1218_vm5, %v2636_v44 }
 0xa4d   : > { %2971 = vmatprep.mubr.f32.mxu0 %v5421_v35  ;;  %5252 = vmatpush1.bf16.msra.mxu0 %v5251_v14 }
 0xa4e   : > { %5254 = vmatprep.subr.bf16.mxu0 %v5253_v24 }
 0xa51   : > { %5256 = vmatpush1.bf16.msra.mxu0 %v5255_v28 }
 0xa52   : > { %5258 = vmatprep.subr.bf16.mxu0 %v5257_v12 }
 0xa55   : > { %5260 = vmatpush1.bf16.msra.mxu0 %v5259_v33 }
 0xa56   : > { %5262 = vmatprep.subr.bf16.mxu0 %v5261_v38 }
 0xa59   : > { %5264 = vmatpush1.bf16.msra.mxu0 %v5263_v40 }
 0xa5a   : > { %5091 = vmatprep.subr.mxu0 %v5421_v35 }
 0xb1f   : > { %v2734_v56 = vpop.f32.mrb[22].mxu0 }
 0xb20   : > { %v2735_v57 = vadd.f32 %v2734_v56, %v2658_v54  ;;  %v2736_v58 = vpop.f32.mrb[23].mxu0 }
 0xb21   : > { %v2737_v59 = vadd.f32 %v2736_v58, %v2662_v55 }
 0xb22   : > { %v2739_v61 = vmax.f32 %v2735_v57, 0.0 }
 0xb23   : > { %v2740_v60 = vmax.f32 %v2737_v59, 0.0 }
 0xb25   : > { %2842 = vmatprep.mubr.f32.mxu1 %v2740_v60 }
 0xb26   : > { %2843 = vmatmul.mubr.f32.vlgmr.msra.gmra.mrb[10].mxu1 %v2739_v61 }
 0xb27   : > { %5113 = vmatprep.mubr.msk.f32.mxu1 %vm5422_vm2, %v5421_v35 }
 0xbf9   : > { %v4930_v62 = vpop.f32.mrb[10].mxu1 }
 0xbfa   : > { %v4931_v0 = vpop.f32.mrb[11].mxu1 }
 0xbfb   : > { %v4932_v1 = vadd.f32 %v4931_v0, %v4930_v62 }
 0xbfd   : > { %v2845_v3 = vadd.f32 %v4932_v1, %v4749_v63 }
 0xbff   : > { %v2848_v5 = vadd.f32 %v2845_v3, %v2636_v44 }
 0xc01   : > { %v2851_v7 = vsel %vm1218_vm5, %v2848_v5, 0.0 }
 0xc02   : > { %2852 = vadd.xlane.f32.xlu0 %v2851_v7 }
 0xc8f   : > { %v2853_v10 = vpop.xlane.xlu0 %2852 }
 0xc90   : > { %v2854_v11 = vmul.f32 0.015625, %v2853_v10 }
 0xc92   : > { %v2855_v15 = vsub.f32 %v2848_v5, %v2854_v11 }
 0xc94   : > { %v2856_v2 = vmul.f32 %v2855_v15, %v2855_v15 }
 0xc96   : > { %v2857_v4 = vsel %vm1218_vm5, %v2856_v2, 0.0 }
 0xc97   : > { %2858 = vadd.xlane.f32.xlu0 %v2857_v4 }
 0xd24   : > { %v2859_v41 = vpop.xlane.xlu0 %2858 }
 0xd25   : > { %v2860_v42 = vmul.f32 0.015625, %v2859_v41 }
 0xd27   : > { %v2861_v43 = vadd.f32 1e-05, %v2860_v42 }
 0xd29   : > { %5391 = vrsqrt.f32 %v2861_v43 }
 0xd33   : > { %v5392_v44 = vpop.eup %5391 }
 0xd34   : > { %v2863_v46 = vmul.f32 %v5392_v44, %v2855_v15 }
 0xd36   : > { %v2868_v27 = vmul.f32 %v4750_v45, %v2863_v46 }
 0xd38   : > { %v6096_v48 = vadd.f32 %v4751_v47, %v2868_v27 }
 0xd3a   : > { %4769 = vmatmul.mubr.msk.f32.vlgmr.msra.gmra.mrb[24].mxu0 %vm1218_vm5, %v6096_v48 }
 0xd3b   : > { %5093 = vmatprep.mubr.msk.f32.mxu0 %vm5422_vm2, %v5421_v35 }
 0xe0d   : > { %v2973_v51 = vpop.f32.mrb[24].mxu0 }
 0xe0e   : > { %v2974_v52 = vadd.f32 %v2973_v51, %v2897_v50  ;;  %v6109_v53 = vpop.f32.mrb[25].mxu0 }
 0xe10   : > { %2982 = vrot.lane.b32.xlu1 %v2974_v52, %s5428_s26  ;;  %2979 = vrot.lane.b32.xlu0 %v2974_v52, %s6530_s29 }
 0xe14   : > { %2985 = vrot.lane.b32.xlu1 %v2974_v52, %s6531_s20 }
 0xe18   : > { %3124 = vrot.lane.b32.xlu1 %v2974_v52, %s6532_s21 }
 0xe82   : > { %v2983_v54 = vpop.permute.xlu1 %2982  ;;  %v2980_v55 = vpop.permute.xlu0 %2979 }
 0xe83   : > { %3128 = vrot.lane.b32.xlu1 %v2983_v54, %s6532_s21  ;;  %3126 = vrot.lane.b32.xlu0 %v2980_v55, %s6532_s21  ;;  %v2988_v56 = vcombine.low %v2974_v52, %v2983_v54  ;;  %v2989_v57 = vcombine.high %v2974_v52, %v2983_v54 }
 0xe85   : > { %v2996_v61 = vrot.slane %v2988_v56, %v5619_v16  ;;  %v3003_v62 = vrot.slane %v2989_v57, %v5619_v16 }
 0xe86   : > { %v2986_v58 = vpop.permute.xlu1 %2985 }
 0xe87   : > { %v3004_v59 = vcombine.low %v2980_v55, %v2986_v58  ;;  %v3005_v60 = vcombine.high %v2980_v55, %v2986_v58  ;;  %3130 = vrot.lane.b32.xlu0 %v2986_v58, %s6532_s21 }
 0xe89   : > { %v3012_v63 = vrot.slane %v3004_v59, %v5619_v16  ;;  %v3019_v0 = vrot.slane %v3005_v60, %v5619_v16 }
 0xe8a   : > { %v3125_v36 = vpop.permute.xlu1 %3124 }
 0xe8b   : > { %v3020_v1 = vcombine.low %v2996_v61, %v3012_v63  ;;  %v3021_v3 = vcombine.high %v2996_v61, %v3012_v63  ;;  %v3036_v5 = vcombine.low %v3003_v62, %v3019_v0  ;;  %v3037_v7 = vcombine.high %v3003_v62, %v3019_v0 }
 0xe8d   : > { %v3028_v10 = vrot.slane %v3020_v1, %v5622_v21  ;;  %v3035_v11 = vrot.slane %v3021_v3, %v5622_v21  ;;  %v3044_v15 = vrot.slane %v3036_v5, %v5622_v21  ;;  %v3051_v2 = vrot.slane %v3037_v7, %v5622_v21 }
 0xe8f   : > { %v3056_v4 = vcombine.low %v3028_v10, %v3035_v11  ;;  %v4770_v6 = vcombine.high %v3028_v10, %v3035_v11  ;;  %v3072_v18 = vcombine.low %v3044_v15, %v3051_v2  ;;  %v4771_v20 = vcombine.high %v3044_v15, %v3051_v2 }
 0xe91   : > { %v3063_v22 = vrot.slane %v3056_v4, %v5619_v16  ;;  %v3071_v8 = vrot.slane %v4770_v6, %v5619_v16  ;;  %v3079_v14 = vrot.slane %v3072_v18, %v5619_v16  ;;  %v3087_v23 = vrot.slane %v4771_v20, %v5619_v16 }
 0xe93   : > { %v3088_v19 = vcombine.low %v3063_v22, %v3071_v8  ;;  %v3089_v24 = vcombine.high %v3063_v22, %v3071_v8  ;;  %v3104_v25 = vcombine.low %v3079_v14, %v3087_v23  ;;  %v3105_v26 = vcombine.high %v3079_v14, %v3087_v23 }
 0xe95   : > { %v3096_v28 = vrot.slane %v3088_v19, %v5622_v21  ;;  %v3112_v29 = vrot.slane %v3104_v25, %v5622_v21  ;;  %v3103_v30 = vrot.slane %v3089_v24, %v5622_v21  ;;  %v3119_v12 = vrot.slane %v3105_v26, %v5622_v21 }
 0xe97   : > { %v3120_v31 = vcombine.low %v3096_v28, %v3112_v29  ;;  %v3121_v32 = vcombine.high %v3096_v28, %v3112_v29  ;;  %v3122_v33 = vcombine.low %v3103_v30, %v3119_v12  ;;  %v3123_v34 = vcombine.high %v3103_v30, %v3119_v12 }
 0xe98   : > { %v2901_v12 = vrot.slane %v6105_v49, %v5769_v9 }
 0xef5   : > { %v3129_v37 = vpop.permute.xlu1 %3128  ;;  %v3127_v38 = vpop.permute.xlu0 %3126 }
 0xef6   : > { %v3136_v39 = vcombine.low %v3125_v36, %v3129_v37  ;;  %v3137_v40 = vcombine.high %v3125_v36, %v3129_v37 }
 0xef8   : > { %v3144_v44 = vrot.slane %v3136_v39, %v5619_v16  ;;  %v3151_v45 = vrot.slane %v3137_v40, %v5619_v16 }
 0xef9   : > { %v3131_v41 = vpop.permute.xlu0 %3130 }
 0xefa   : > { %v3152_v42 = vcombine.low %v3127_v38, %v3131_v41  ;;  %v3153_v43 = vcombine.high %v3127_v38, %v3131_v41 }
 0xefc   : > { %v3160_v46 = vrot.slane %v3152_v42, %v5619_v16  ;;  %v3167_v47 = vrot.slane %v3153_v43, %v5619_v16 }
 0xefe   : > { %v3168_v27 = vcombine.low %v3144_v44, %v3160_v46  ;;  %v3169_v50 = vcombine.high %v3144_v44, %v3160_v46  ;;  %v3184_v51 = vcombine.low %v3151_v45, %v3167_v47  ;;  %v3185_v52 = vcombine.high %v3151_v45, %v3167_v47 }
 0xf00   : > { %v3176_v54 = vrot.slane %v3168_v27, %v5622_v21  ;;  %v3183_v55 = vrot.slane %v3169_v50, %v5622_v21  ;;  %v3192_v56 = vrot.slane %v3184_v51, %v5622_v21  ;;  %v3199_v57 = vrot.slane %v3185_v52, %v5622_v21 }
 0xf02   : > { %v3204_v58 = vcombine.low %v3176_v54, %v3183_v55  ;;  %v4772_v59 = vcombine.high %v3176_v54, %v3183_v55  ;;  %v3220_v60 = vcombine.low %v3192_v56, %v3199_v57  ;;  %v4773_v61 = vcombine.high %v3192_v56, %v3199_v57 }
 0xf04   : > { %v3211_v62 = vrot.slane %v3204_v58, %v5619_v16  ;;  %v3219_v63 = vrot.slane %v4772_v59, %v5619_v16  ;;  %v3227_v0 = vrot.slane %v3220_v60, %v5619_v16  ;;  %v3235_v1 = vrot.slane %v4773_v61, %v5619_v16 }
 0xf06   : > { %v3236_v3 = vcombine.low %v3211_v62, %v3219_v63  ;;  %v3252_v5 = vcombine.low %v3227_v0, %v3235_v1  ;;  %v3237_v11 = vcombine.high %v3211_v62, %v3219_v63  ;;  %v3253_v15 = vcombine.high %v3227_v0, %v3235_v1 }
 0xf08   : > { %v3244_v7 = vrot.slane %v3236_v3, %v5622_v21  ;;  %v3260_v10 = vrot.slane %v3252_v5, %v5622_v21  ;;  %v3251_v6 = vrot.slane %v3237_v11, %v5622_v21  ;;  %v3267_v18 = vrot.slane %v3253_v15, %v5622_v21 }
 0xf0a   : > { %v3268_v2 = vcombine.low %v3244_v7, %v3260_v10  ;;  %v3269_v4 = vcombine.high %v3244_v7, %v3260_v10  ;;  %v3270_v20 = vcombine.low %v3251_v6, %v3267_v18  ;;  %v3271_v22 = vcombine.high %v3251_v6, %v3267_v18 }
 0xf0c   : > { %5092 = vmatpush3.xpose.msk.msra.mxu0 %vm595_vm1, %v3268_v2 }
 0xf0d   : > { %5096 = vmatprep.subr.mxu0 %v5421_v35 }
 0xf0f   : > { %5094 = vmatmul.mubr.msk.f32.vlgmr.msra.gmra.mrb[26].mxu0 %vm595_vm1, %v3120_v31 }
 0xf10   : > { %5097 = vmatpush3.xpose.msk.msra.mxu0 %vm595_vm1, %v3269_v4  ;;  %5098 = vmatprep.mubr.msk.f32.mxu0 %vm5422_vm2, %v5421_v35 }
 0xf11   : > { %5101 = vmatprep.subr.mxu0 %v5421_v35 }
 0xf13   : > { %5099 = vmatmul.mubr.msk.f32.vlgmr.msra.gmra.mrb[28].mxu0 %vm595_vm1, %v3121_v32 }
 0xf14   : > { %5102 = vmatpush3.xpose.msk.msra.mxu0 %vm595_vm1, %v3270_v20  ;;  %5103 = vmatprep.mubr.msk.f32.mxu0 %vm5422_vm2, %v5421_v35 }
 0xf15   : > { %5106 = vmatprep.subr.mxu0 %v5421_v35 }
 0xf17   : > { %5104 = vmatmul.mubr.msk.f32.vlgmr.msra.gmra.mrb[30].mxu0 %vm595_vm1, %v3122_v33  ;;  %v2976_v33 = vadd.f32 %v6109_v53, %v2901_v12 }
 0xf18   : > { %5107 = vmatpush3.xpose.msk.msra.mxu0 %vm595_vm1, %v3271_v22  ;;  %5108 = vmatprep.mubr.msk.f32.mxu0 %vm5422_vm2, %v5421_v35 }
 0xf19   : > { %5116 = vmatprep.subr.mxu0 %v5421_v35 }
 0xf1b   : > { %5109 = vmatmul.mubr.msk.f32.vlgmr.msra.gmra.mrb[32].mxu0 %vm595_vm1, %v3123_v34 }
 0xf1c   : > { %5118 = vmatprep.mubr.msk.f32.mxu0 %vm5422_vm2, %v5421_v35 }
 0xfe2   : > { %v3490_v8 = vpop.f32.mrb[26].mxu0 }
 0xfe3   : > { %v5095_v14 = vpop.f32.mrb[27].mxu0  ;;  %v3722_v23 = vsel %vm697_vm0, %v3490_v8, -inf }
 0xfe4   : > { %3723 = vmax.xlane.f32.xlu1 %v3722_v23 }
 0xfe6   : > { %v3566_v19 = vpop.f32.mrb[28].mxu0 }
 0xfe7   : > { %v5100_v24 = vpop.f32.mrb[29].mxu0  ;;  %v3725_v25 = vsel %vm697_vm0, %v3566_v19, -inf }
 0xfe8   : > { %3726 = vmax.xlane.f32.xlu0 %v3725_v25 }
 0xfea   : > { %v3642_v26 = vpop.f32.mrb[30].mxu0 }
 0xfeb   : > { %v5105_v28 = vpop.f32.mrb[31].mxu0  ;;  %v3728_v29 = vsel %vm697_vm0, %v3642_v26, -inf }
 0xfec   : > { %3729 = vmax.xlane.f32.xlu0 %v3728_v29 }
 0xfee   : > { %v3718_v30 = vpop.f32.mrb[32].mxu0 }
 0xfef   : > { %v5110_v31 = vpop.f32.mrb[33].mxu0  ;;  %v3731_v32 = vsel %vm697_vm0, %v3718_v30, -inf }
 0xff0   : > { %3732 = vmax.xlane.f32.xlu0 %v3731_v32 }
 0xff5   : > { %3273 = vrot.lane.b32.xlu1 %v2976_v33, %s6530_s29 }
0x1071   : > { %v3724_v34 = vpop.xlane.xlu1 %3723 }
0x1072   : > { %v3734_v36 = vsub.f32 %v3490_v8, %v3724_v34 }
0x1074   : > { %v3738_v37 = vmul.f32 1.442695, %v3734_v36 }
0x1075   : > { %v3727_v38 = vpop.xlane.xlu0 %3726  ;;  %v3274_v55 = vpop.permute.xlu1 %3273 }
0x1076   : > { %5393 = vpow2.f32 %v3738_v37  ;;  %v3735_v39 = vsub.f32 %v3566_v19, %v3727_v38 }
0x1078   : > { %v3740_v40 = vmul.f32 1.442695, %v3735_v39 }
0x1079   : > { %v3730_v41 = vpop.xlane.xlu0 %3729 }
0x107a   : > { %5395 = vpow2.f32 %v3740_v40  ;;  %v3736_v42 = vsub.f32 %v3642_v26, %v3730_v41 }
0x107c   : > { %v3742_v43 = vmul.f32 1.442695, %v3736_v42 }
0x107d   : > { %v3733_v49 = vpop.xlane.xlu0 %3732 }
0x107e   : > { %5397 = vpow2.f32 %v3742_v43  ;;  %v3737_v44 = vsub.f32 %v3718_v30, %v3733_v49 }
0x1080   : > { %v6178_v45 = vpop.eup %5393  ;;  %v3744_v46 = vmul.f32 1.442695, %v3737_v44 }
0x1081   : > { %v3746_v53 = vsel %vm697_vm0, %v6178_v45, 0.0 }
0x1082   : > { %5399 = vpow2.f32 %v3744_v46  ;;  %3747 = vadd.xlane.f32.xlu1 %v3746_v53 }
0x1084   : > { %v5396_v47 = vpop.eup %5395 }
0x1085   : > { %v3749_v27 = vsel %vm697_vm0, %v5396_v47, 0.0 }
0x1086   : > { %3750 = vadd.xlane.f32.xlu0 %v3749_v27 }
0x1088   : > { %v6183_v50 = vpop.eup %5397 }
0x1089   : > { %v3752_v51 = vsel %vm697_vm0, %v6183_v50, 0.0 }
0x108a   : > { %3753 = vadd.xlane.f32.xlu1 %v3752_v51 }
0x108c   : > { %v6187_v52 = vpop.eup %5399 }
0x108d   : > { %v3755_v54 = vsel %vm697_vm0, %v6187_v52, 0.0 }
0x108e   : > { %3756 = vadd.xlane.f32.xlu0 %v3755_v54 }
0x109b   : > { %3279 = vrot.lane.b32.xlu1 %v2976_v33, %s6531_s20 }
0x10a4   : > { %3276 = vrot.lane.b32.xlu0 %v2976_v33, %s5428_s26 }
0x110f   : > { %v3748_v56 = vpop.xlane.xlu1 %3747 }
0x1110   : > { %5401 = vrcp.f32 %v3748_v56  ;;  %v4795_v56 = vld [vmem:[%s6501_s6 + $0x68] sm:$0xff] }
0x1113   : > { %v3751_v57 = vpop.xlane.xlu0 %3750 }
0x1114   : > { %5403 = vrcp.f32 %v3751_v57 }
0x1117   : > { %v3754_v58 = vpop.xlane.xlu1 %3753 }
0x1118   : > { %5405 = vrcp.f32 %v3754_v58 }
0x111a   : > { %v5402_v29 = vpop.eup %5401 }
0x111b   : > { %v3280_v59 = vpop.permute.xlu1 %3279  ;;  %v3757_v60 = vpop.xlane.xlu0 %3756  ;;  %v3762_v43 = vmul.f32 %v5402_v29, %v6178_v45  ;;  %v4790_v45 = vld [vmem:[%s6501_s6 + $0x40] sm:$0xff] }
0x111c   : > { %v3298_v61 = vcombine.low %v3274_v55, %v3280_v59  ;;  %v3299_v62 = vcombine.high %v3274_v55, %v3280_v59  ;;  %5407 = vrcp.f32 %v3757_v60  ;;  %v4794_v55 = vld [vmem:[%s6501_s6 + $0x60] sm:$0xff] }
0x111d   : > { %v5272_v57 = vpack.c.bf16 %v4795_v56, %v4794_v55 }
0x111e   : > { %v3306_v3 = vrot.slane %v3298_v61, %v5619_v16  ;;  %v3313_v5 = vrot.slane %v3299_v62, %v5619_v16 }
0x111f   : > { %v3277_v63 = vpop.permute.xlu0 %3276 }
0x1120   : > { %v3282_v0 = vcombine.low %v2976_v33, %v3277_v63  ;;  %v3283_v1 = vcombine.high %v2976_v33, %v3277_v63  ;;  %v5404_v33 = vpop.eup %5403 }
0x1121   : > { %v3763_v49 = vmul.f32 %v5404_v33, %v5396_v47  ;;  %v4791_v47 = vld [vmem:[%s6501_s6 + $0x48] sm:$0xff] }
0x1122   : > { %v3290_v7 = vrot.slane %v3282_v0, %v5619_v16  ;;  %v3297_v10 = vrot.slane %v3283_v1, %v5619_v16  ;;  %v5406_v37 = vpop.eup %5405  ;;  %v5266_v51 = vpack.c.bf16 %v4791_v47, %v4790_v45 }
0x1123   : > { %v3764_v53 = vmul.f32 %v5406_v37, %v6183_v50  ;;  %v4792_v50 = vld [vmem:[%s6501_s6 + $0x50] sm:$0xff] }
0x1124   : > { %v3314_v11 = vcombine.low %v3290_v7, %v3306_v3  ;;  %v3315_v15 = vcombine.high %v3290_v7, %v3306_v3  ;;  %v3330_v2 = vcombine.low %v3297_v10, %v3313_v5  ;;  %v3331_v4 = vcombine.high %v3297_v10, %v3313_v5 }
0x1126   : > { %v3322_v6 = vrot.slane %v3314_v11, %v5622_v21  ;;  %v3329_v18 = vrot.slane %v3315_v15, %v5622_v21  ;;  %v3338_v20 = vrot.slane %v3330_v2, %v5622_v21  ;;  %v3345_v22 = vrot.slane %v3331_v4, %v5622_v21  ;;  %v5408_v42 = vpop.eup %5407 }
0x1127   : > { %v3765_v27 = vmul.f32 %v5408_v42, %v6187_v52  ;;  %v4793_v52 = vld [vmem:[%s6501_s6 + $0x58] sm:$0xff] }
0x1128   : > { %v3350_v8 = vcombine.low %v3322_v6, %v3329_v18  ;;  %v4774_v14 = vcombine.high %v3322_v6, %v3329_v18  ;;  %v3366_v23 = vcombine.low %v3338_v20, %v3345_v22  ;;  %v4775_v19 = vcombine.high %v3338_v20, %v3345_v22 }
0x1129   : > { %v5269_v54 = vpack.c.bf16 %v4793_v52, %v4792_v50 }
0x112a   : > { %v3357_v24 = vrot.slane %v3350_v8, %v5619_v16  ;;  %v3365_v25 = vrot.slane %v4774_v14, %v5619_v16  ;;  %v3373_v26 = vrot.slane %v3366_v23, %v5619_v16  ;;  %v3381_v28 = vrot.slane %v4775_v19, %v5619_v16  ;;  %v4796_v8 = vld [vmem:[%s6501_s6 + $0x70] sm:$0xff]  ;;  %v4797_v14 = vld [vmem:[%s6501_s6 + $0x78] sm:$0xff] }
0x112c   : > { %v3382_v30 = vcombine.low %v3357_v24, %v3365_v25  ;;  %v3398_v12 = vcombine.low %v3373_v26, %v3381_v28  ;;  %v3383_v31 = vcombine.high %v3357_v24, %v3365_v25  ;;  %v3399_v32 = vcombine.high %v3373_v26, %v3381_v28 }
0x112d   : > { %v5275_v26 = vpack.c.bf16 %v4797_v14, %v4796_v8  ;;  %v4812_v8 = vld [vmem:[%s6503_s8 + $0xd0] sm:$0xff] }
0x112e   : > { %v3390_v34 = vrot.slane %v3382_v30, %v5622_v21  ;;  %v3406_v36 = vrot.slane %v3398_v12, %v5622_v21  ;;  %v3397_v38 = vrot.slane %v3383_v31, %v5622_v21  ;;  %v3413_v39 = vrot.slane %v3399_v32, %v5622_v21 }
0x1130   : > { %v3414_v40 = vcombine.low %v3390_v34, %v3406_v36  ;;  %v3415_v41 = vcombine.high %v3390_v34, %v3406_v36  ;;  %v3416_v44 = vcombine.low %v3397_v38, %v3413_v39  ;;  %v3417_v46 = vcombine.high %v3397_v38, %v3413_v39 }
0x1132   : > { %5112 = vmatpush3.msra.mxu1 %v3414_v40  ;;  %5117 = vmatpush3.msra.mxu0 %v3415_v41 }
0x1133   : > { %5114 = vmatmul.mubr.msk.f32.vlgmr.msra.gmra.mrb[12].mxu1 %vm697_vm0, %v3762_v43  ;;  %5119 = vmatmul.mubr.msk.f32.vlgmr.msra.gmra.mrb[34].mxu0 %vm697_vm0, %v3763_v49 }
0x1134   : > { %5121 = vmatprep.subr.mxu1 %v5421_v35  ;;  %5126 = vmatprep.subr.mxu0 %v5421_v35 }
0x1135   : > { %5122 = vmatpush3.msra.mxu1 %v3416_v44  ;;  %5127 = vmatpush3.msra.mxu0 %v3417_v46 }
0x1136   : > { %5123 = vmatprep.mubr.msk.f32.mxu1 %vm5422_vm2, %v5421_v35  ;;  %5128 = vmatprep.mubr.msk.f32.mxu0 %vm5422_vm2, %v5421_v35 }
0x1137   : > { %5124 = vmatmul.mubr.msk.f32.vlgmr.msra.gmra.mrb[14].mxu1 %vm697_vm0, %v3764_v53  ;;  %5129 = vmatmul.mubr.msk.f32.vlgmr.msra.gmra.mrb[36].mxu0 %vm697_vm0, %v3765_v27 }
0x1138   : > { %5265 = vmatprep.subr.bf16.mxu1 %v5432_v17  ;;  %5147 = vmatprep.mubr.msk.f32.mxu1 %vm5422_vm2, %v5421_v35 }
0x1139   : > { %4419 = vmatprep.mubr.f32.mxu0 %v5421_v35  ;;  %5267 = vmatpush3.bf16.msra.mxu1 %v5266_v51 }
0x113a   : > { %5268 = vmatprep.subr.bf16.mxu1 %v5432_v17 }
0x113d   : > { %5270 = vmatpush3.bf16.msra.mxu1 %v5269_v54 }
0x113e   : > { %5271 = vmatprep.subr.bf16.mxu1 %v5432_v17 }
0x1141   : > { %5273 = vmatpush3.bf16.msra.mxu1 %v5272_v57 }
0x1142   : > { %5274 = vmatprep.subr.bf16.mxu1 %v5432_v17 }
0x1145   : > { %5276 = vmatpush3.bf16.msra.mxu1 %v5275_v26  ;;  %v4816_v26 = vld [vmem:[%s6503_s8 + $0xf0] sm:$0xff] }
0x1206   : > { %v3835_v58 = vpop.f32.mrb[12].mxu1  ;;  %v3908_v59 = vpop.f32.mrb[34].mxu0 }
0x1207   : > { %v5115_v60 = vpop.f32.mrb[13].mxu1  ;;  %v5120_v61 = vpop.f32.mrb[35].mxu0 }
0x120a   : > { %v3981_v62 = vpop.f32.mrb[14].mxu1  ;;  %v4054_v63 = vpop.f32.mrb[36].mxu0 }
0x120b   : > { %v4058_v0 = vcombine.low %v3835_v58, %v3981_v62  ;;  %v4059_v1 = vcombine.high %v3835_v58, %v3981_v62  ;;  %v4074_v3 = vcombine.low %v3908_v59, %v4054_v63  ;;  %v4075_v5 = vcombine.high %v3908_v59, %v4054_v63  ;;  %v5125_v7 = vpop.f32.mrb[15].mxu1  ;;  %v5130_v10 = vpop.f32.mrb[37].mxu0  ;;  %v4803_v63 = vld [vmem:[%s6503_s8 + $0x88] sm:$0xff] }
0x120c   : > { %v4807_v7 = vld [vmem:[%s6503_s8 + $0xa8] sm:$0xff]  ;;  %v4809_v10 = vld [vmem:[%s6503_s8 + $0xb8] sm:$0xff] }
0x120d   : > { %v4066_v11 = vrot.slane %v4058_v0, %v5619_v16  ;;  %v4073_v15 = vrot.slane %v4059_v1, %v5619_v16  ;;  %v4082_v2 = vrot.slane %v4074_v3, %v5619_v16  ;;  %v4089_v4 = vrot.slane %v4075_v5, %v5619_v16  ;;  %v4802_v1 = vld [vmem:[%s6503_s8 + $0x80] sm:$0xff]  ;;  %v4804_v3 = vld [vmem:[%s6503_s8 + $0x90] sm:$0xff] }
0x120e   : > { %v5279_v5 = vpack.c.bf16 %v4804_v3, %v4802_v1 }
0x120f   : > { %v4090_v6 = vcombine.low %v4066_v11, %v4082_v2  ;;  %v4091_v18 = vcombine.high %v4066_v11, %v4082_v2  ;;  %v4106_v20 = vcombine.low %v4073_v15, %v4089_v4  ;;  %v4107_v22 = vcombine.high %v4073_v15, %v4089_v4  ;;  %v4806_v15 = vld [vmem:[%s6503_s8 + $0xa0] sm:$0xff]  ;;  %v4808_v2 = vld [vmem:[%s6503_s8 + $0xb0] sm:$0xff] }
0x1210   : > { %v5281_v11 = vpack.c.bf16 %v4809_v10, %v4807_v7  ;;  %v5283_v4 = vpack.c.bf16 %v4808_v2, %v4806_v15  ;;  %v4801_v2 = vld [vmem:[%s6508_s13 + $0x1] ss:$0 sm:$0xff] }
0x1211   : > { %v4098_v23 = vrot.slane %v4090_v6, %v5622_v21  ;;  %v4105_v19 = vrot.slane %v4091_v18, %v5622_v21  ;;  %v4114_v24 = vrot.slane %v4106_v20, %v5622_v21  ;;  %v4121_v25 = vrot.slane %v4107_v22, %v5622_v21  ;;  %v4811_v6 = vld [vmem:[%s6503_s8 + $0xc8] sm:$0xff]  ;;  %v4813_v18 = vld [vmem:[%s6503_s8 + $0xd8] sm:$0xff]  ;;  %v4810_v22 = vld [vmem:[%s6503_s8 + $0xc0] sm:$0xff] }
0x1212   : > { %v5285_v20 = vpack.c.bf16 %v4813_v18, %v4811_v6  ;;  %v5287_v14 = vpack.c.bf16 %v4812_v8, %v4810_v22  ;;  %v4832_v18 = vld [vmem:[%s6505_s10 + $0x160] sm:$0xff]  ;;  %v4850_v22 = vld [vmem:[%s6505_s10 + $0x1f0] sm:$0xff]  ;;  %v4851_v8 = vld [vmem:[%s6505_s10 + $0x1f8] sm:$0xff] }
0x1213   : > { %v4126_v28 = vcombine.low %v4098_v23, %v4105_v19  ;;  %v4788_v29 = vcombine.high %v4098_v23, %v4105_v19  ;;  %v4142_v30 = vcombine.low %v4114_v24, %v4121_v25  ;;  %v4789_v12 = vcombine.high %v4114_v24, %v4121_v25  ;;  %v4815_v23 = vld [vmem:[%s6503_s8 + $0xe8] sm:$0xff]  ;;  %v4817_v19 = vld [vmem:[%s6503_s8 + $0xf8] sm:$0xff]  ;;  %v4814_v24 = vld [vmem:[%s6503_s8 + $0xe0] sm:$0xff] }
0x1214   : > { %v5289_v25 = vpack.c.bf16 %v4817_v19, %v4815_v23  ;;  %v4835_v23 = vld [vmem:[%s6505_s10 + $0x178] sm:$0xff] }
0x1215   : > { %v4133_v31 = vrot.slane %v4126_v28, %v5619_v16  ;;  %v4141_v32 = vrot.slane %v4788_v29, %v5619_v16  ;;  %v4149_v33 = vrot.slane %v4142_v30, %v5619_v16  ;;  %v4157_v34 = vrot.slane %v4789_v12, %v5619_v16  ;;  %v4836_v29 = vld [vmem:[%s6505_s10 + $0x180] sm:$0xff]  ;;  %v4837_v30 = vld [vmem:[%s6505_s10 + $0x188] sm:$0xff] }
0x1216   : > { %v5291_v28 = vpack.c.bf16 %v4816_v26, %v4814_v24  ;;  %v4820_v12 = vld [vmem:[%s6505_s10 + $0x100] sm:$0xff] }
0x1217   : > { %v4159_v36 = vcombine.high %v4133_v31, %v4141_v32  ;;  %v4175_v37 = vcombine.high %v4149_v33, %v4157_v34  ;;  %v4158_v38 = vcombine.low %v4133_v31, %v4141_v32  ;;  %v4174_v39 = vcombine.low %v4149_v33, %v4157_v34  ;;  %v4821_v32 = vld [vmem:[%s6505_s10 + $0x108] sm:$0xff]  ;;  %v4838_v33 = vld [vmem:[%s6505_s10 + $0x190] sm:$0xff]  ;;  %v4839_v34 = vld [vmem:[%s6505_s10 + $0x198] sm:$0xff] }
0x1218   : > { %v5293_v31 = vpack.c.bf16 %v4837_v30, %v4836_v29  ;;  %v4818_v24 = vld [vmem:[%s6504_s9 + $0x1] ss:$2 sm:$0x3] }
0x1219   : > { %v4173_v40 = vrot.slane %v4159_v36, %v5622_v21  ;;  %v4189_v41 = vrot.slane %v4175_v37, %v5622_v21  ;;  %v4166_v42 = vrot.slane %v4158_v38, %v5622_v21  ;;  %v4182_v43 = vrot.slane %v4174_v39, %v5622_v21  ;;  %v4798_v21 = vld [vmem:[%s6502_s7 + $0x1] ss:$0 sm:$0xff]  ;;  %v4822_v38 = vld [vmem:[%s6505_s10 + $0x110] sm:$0xff]  ;;  %v4823_v39 = vld [vmem:[%s6505_s10 + $0x118] sm:$0xff] }
0x121a   : > { %v5295_v36 = vpack.c.bf16 %v4821_v32, %v4820_v12  ;;  %v5297_v37 = vpack.c.bf16 %v4839_v34, %v4838_v33  ;;  %5294 = vmatprep.subr.bf16.mxu1 %v5293_v31  ;;  %v4349_v26 = vrot.slane %v4818_v24, %v5769_v9  ;;  %v4852_v34 = vld [vmem:[%s6506_s11 + $0x1] ss:$0 sm:$0xff] }
0x121b   : > { %v4193_v49 = vcombine.high %v4173_v40, %v4189_v41  ;;  %v4191_v44 = vcombine.high %v4166_v42, %v4182_v43  ;;  %v4192_v46 = vcombine.low %v4173_v40, %v4189_v41  ;;  %v4190_v53 = vcombine.low %v4166_v42, %v4182_v43  ;;  %v4840_v40 = vld [vmem:[%s6505_s10 + $0x1a0] sm:$0xff]  ;;  %v4841_v41 = vld [vmem:[%s6505_s10 + $0x1a8] sm:$0xff] }
0x121c   : > { %v5299_v42 = vpack.c.bf16 %v4823_v39, %v4822_v38  ;;  %v5301_v43 = vpack.c.bf16 %v4841_v41, %v4840_v40 }
0x121d   : > { %4203 = vrot.lane.b32.xlu0 %v4193_v49, %s6533_s30  ;;  %4195 = vrot.lane.b32.xlu1 %v4191_v44, %s6534_s19  ;;  %v4824_v49 = vld [vmem:[%s6505_s10 + $0x120] sm:$0xff]  ;;  %v4825_v44 = vld [vmem:[%s6505_s10 + $0x128] sm:$0xff]  ;;  %s588_s19 = scalar_lea.vmem %s6513_s18, %s6537_s28 }
0x1221   : > { %4199 = vrot.lane.b32.xlu1 %v4192_v46, %s6535_s23  ;;  %v4842_v46 = vld [vmem:[%s6505_s10 + $0x1b0] sm:$0xff] }
0x128f   : > { %v4196_v16 = vpop.permute.xlu1 %4195  ;;  %v4204_v47 = vpop.permute.xlu0 %4203 }
0x1290   : > { %v4206_v27 = vsel %vm595_vm1, %v4190_v53, %v4196_v16  ;;  %v4843_v53 = vld [vmem:[%s6505_s10 + $0x1b8] sm:$0xff]  ;;  %v5303_v16 = vpack.c.bf16 %v4825_v44, %v4824_v49  ;;  %v4562_v49 = vld [vmem:[%s6511_s16] sm:$0xff]  ;;  %v4563_v44 = vld [vmem:[%s6511_s16 + $0x8] sm:$0xff] }
0x1293   : > { %v4200_v45 = vpop.permute.xlu1 %4199 }
0x1294   : > { %v4207_v50 = vsel %vm1183_vm3, %v4206_v27, %v4200_v45  ;;  %v5305_v27 = vpack.c.bf16 %v4843_v53, %v4842_v46  ;;  %v4826_v45 = vld [vmem:[%s6505_s10 + $0x130] sm:$0xff]  ;;  %v5326_v46 = vpack.c.bf16 %v4563_v44, %v4562_v49 }
0x1295   : > { %v4208_v51 = vsel %vm1185_vm4, %v4207_v50, %v4204_v47  ;;  %v4827_v47 = vld [vmem:[%s6505_s10 + $0x138] sm:$0xff]  ;;  %v4844_v50 = vld [vmem:[%s6505_s10 + $0x1c0] sm:$0xff]  ;;  %v4564_v53 = vld [vmem:[%s6511_s16 + $0x10] sm:$0xff] }
0x1296   : > { %5148 = vmatmul.mubr.msk.f32.vlgmr.msra.gmra.mrb[16].mxu1 %vm1218_vm5, %v4208_v51  ;;  %v4845_v51 = vld [vmem:[%s6505_s10 + $0x1c8] sm:$0xff] }
0x1297   : > { %5296 = vmatpush3.bf16.msra.mxu1 %v5295_v36 }
0x1298   : > { %5298 = vmatprep.subr.bf16.mxu1 %v5297_v37 }
0x129b   : > { %5300 = vmatpush3.bf16.msra.mxu1 %v5299_v42 }
0x129c   : > { %5302 = vmatprep.subr.bf16.mxu1 %v5301_v43 }
0x129f   : > { %5304 = vmatpush3.bf16.msra.mxu1 %v5303_v16  ;;  %v4565_v16 = vld [vmem:[%s6511_s16 + $0x18] sm:$0xff] }
0x12a0   : > { %5306 = vmatprep.subr.bf16.mxu1 %v5305_v27  ;;  %v5329_v27 = vpack.c.bf16 %v4565_v16, %v4564_v53 }
0x1369   : > { %v4292_v52 = vpop.f32.mrb[16].mxu1 }
0x136a   : > { %v4293_v54 = vadd.f32 %v4798_v21, %v4292_v52  ;;  %v5149_v55 = vpop.f32.mrb[17].mxu1  ;;  %v5307_v21 = vpack.c.bf16 %v4827_v47, %v4826_v45  ;;  %v5309_v52 = vpack.c.bf16 %v4845_v51, %v4844_v50  ;;  %v4566_v45 = vld [vmem:[%s6511_s16 + $0x20] sm:$0xff]  ;;  %v4567_v47 = vld [vmem:[%s6511_s16 + $0x28] sm:$0xff]  ;;  %v4568_v51 = vld [vmem:[%s6511_s16 + $0x30] sm:$0xff] }
0x136b   : > { %v4829_v55 = vld [vmem:[%s6505_s10 + $0x148] sm:$0xff]  ;;  %v5332_v50 = vpack.c.bf16 %v4567_v47, %v4566_v45 }
0x136c   : > { %v4296_v56 = vadd.f32 %v4293_v54, %v6096_v48  ;;  %v4805_v48 = vld [vmem:[%s6503_s8 + $0x98] sm:$0xff]  ;;  %v4828_v54 = vld [vmem:[%s6505_s10 + $0x140] sm:$0xff]  ;;  %5308 = vmatpush3.bf16.msra.mxu1 %v5307_v21 }
0x136d   : > { %v5277_v0 = vpack.c.bf16 %v4805_v48, %v4803_v63  ;;  %5310 = vmatprep.subr.bf16.mxu1 %v5309_v52  ;;  %v4848_v63 = vld [vmem:[%s6505_s10 + $0x1e0] sm:$0xff]  ;;  %v4849_v48 = vld [vmem:[%s6505_s10 + $0x1e8] sm:$0xff]  ;;  %v4569_v21 = vld [vmem:[%s6511_s16 + $0x38] sm:$0xff] }
0x136e   : > { %v4299_v57 = vsel %vm1218_vm5, %v4296_v56, 0.0  ;;  %v5317_v1 = vpack.c.bf16 %v4849_v48, %v4848_v63  ;;  %v5335_v52 = vpack.c.bf16 %v4569_v21, %v4568_v51  ;;  %v4570_v48 = vld [vmem:[%s6512_s17] sm:$0x1] }
0x136f   : > { %4300 = vadd.xlane.f32.xlu1 %v4299_v57  ;;  %5278 = vmatprep.subr.bf16.mxu0 %v5277_v0  ;;  %v4847_v57 = vld [vmem:[%s6505_s10 + $0x1d8] sm:$0xff] }
0x1370   : > { %5280 = vmatpush1.bf16.msra.mxu0 %v5279_v5 }
0x1371   : > { %5282 = vmatprep.subr.bf16.mxu0 %v5281_v11  ;;  %v4800_v11 = vld [vmem:[%s6507_s12 + $0x1] ss:$0 sm:$0xff] }
0x1374   : > { %5284 = vmatpush1.bf16.msra.mxu0 %v5283_v4 }
0x1375   : > { %5286 = vmatprep.subr.bf16.mxu0 %v5285_v20  ;;  %v4833_v20 = vld [vmem:[%s6505_s10 + $0x168] sm:$0xff] }
0x1378   : > { %5288 = vmatpush1.bf16.msra.mxu0 %v5287_v14  ;;  %v5321_v14 = vpack.c.bf16 %v4851_v8, %v4850_v22 }
0x1379   : > { %5290 = vmatprep.subr.bf16.mxu0 %v5289_v25  ;;  %v4345_v25 = vrot.slane %v4818_v24, %v5682_v13 }
0x137c   : > { %5292 = vmatpush1.bf16.msra.mxu0 %v5291_v28 }
0x137d   : > { %5325 = vmatprep.subr.bf16.mxu0 %v5432_v17 }
0x13fc   : > { %v4301_v58 = vpop.xlane.xlu1 %4300 }
0x13fd   : > { %v4302_v59 = vmul.f32 0.015625, %v4301_v58  ;;  %v5311_v58 = vpack.c.bf16 %v4829_v55, %v4828_v54 }
0x13ff   : > { %v6281_v60 = vsub.f32 %v4296_v56, %v4302_v59  ;;  %v4846_v56 = vld [vmem:[%s6505_s10 + $0x1d0] sm:$0xff]  ;;  %5312 = vmatpush3.bf16.msra.mxu1 %v5311_v58  ;;  %v4853_v58 = vld [vmem:[%s6509_s14 + $0x1] ss:$0 sm:$0xff] }
0x1400   : > { %v5313_v59 = vpack.c.bf16 %v4847_v57, %v4846_v56 }
0x1401   : > { %v4304_v61 = vmul.f32 %v6281_v60, %v6281_v60 }
0x1402   : > { %5314 = vmatprep.subr.bf16.mxu1 %v5313_v59 }
0x1403   : > { %v4305_v62 = vsel %vm1218_vm5, %v4304_v61, 0.0  ;;  %v4830_v61 = vld [vmem:[%s6505_s10 + $0x150] sm:$0xff] }
0x1404   : > { %4306 = vadd.xlane.f32.xlu0 %v4305_v62  ;;  %v4831_v62 = vld [vmem:[%s6505_s10 + $0x158] sm:$0xff] }
0x1405   : > { %v5315_v0 = vpack.c.bf16 %v4831_v62, %v4830_v61  ;;  %v4854_v61 = vld [vmem:[%s6510_s15 + $0x1] ss:$0 sm:$0xff] }
0x1407   : > { %5316 = vmatpush3.bf16.msra.mxu1 %v5315_v0 }
0x1408   : > { %5318 = vmatprep.subr.bf16.mxu1 %v5317_v1 }
0x1491   : > { %v4307_v3 = vpop.xlane.xlu0 %4306 }
0x1492   : > { %v4308_v5 = vmul.f32 0.015625, %v4307_v3 }
0x1494   : > { %v4309_v7 = vadd.f32 1e-05, %v4308_v5 }
0x1496   : > { %5409 = vrsqrt.f32 %v4309_v7 }
0x14a0   : > { %v5410_v10 = vpop.eup %5409 }
0x14a1   : > { %v4311_v15 = vmul.f32 %v5410_v10, %v6281_v60  ;;  %v5319_v60 = vpack.c.bf16 %v4833_v20, %v4832_v18 }
0x14a3   : > { %v4316_v4 = vmul.f32 %v4800_v11, %v4311_v15  ;;  %5320 = vmatpush3.bf16.msra.mxu1 %v5319_v60 }
0x14a4   : > { %5322 = vmatprep.subr.bf16.mxu1 %v5321_v14 }
0x14a5   : > { %v4321_v6 = vadd.f32 %v4801_v2, %v4316_v4 }
0x14a7   : > { %4819 = vmatmul.mubr.msk.f32.vlgmr.msra.gmra.mrb[38].mxu0 %vm1218_vm5, %v4321_v6 }
0x14a8   : > { %5166 = vmatprep.mubr.msk.f32.mxu0 %vm5422_vm2, %v5421_v35  ;;  %v4834_v35 = vld [vmem:[%s6505_s10 + $0x170] sm:$0xff]  ;;  %5327 = vmatpush3.bf16.msra.mxu0 %v5326_v46 }
0x14a9   : > { %v5323_v19 = vpack.c.bf16 %v4835_v23, %v4834_v35  ;;  %5328 = vmatprep.subr.bf16.mxu0 %v5432_v17 }
0x14ab   : > { %5324 = vmatpush3.bf16.msra.mxu1 %v5323_v19 }
0x14ac   : > { %5330 = vmatpush3.bf16.msra.mxu0 %v5329_v27 }
0x14ad   : > { %5331 = vmatprep.subr.bf16.mxu0 %v5432_v17 }
0x14b0   : > { %5333 = vmatpush3.bf16.msra.mxu0 %v5332_v50 }
0x14b1   : > { %5334 = vmatprep.subr.bf16.mxu0 %v5432_v17 }
0x14b4   : > { %5336 = vmatpush3.bf16.msra.mxu0 %v5335_v52 }
0x157a   : > { %v4421_v28 = vpop.f32.mrb[38].mxu0 }
0x157b   : > { %v4422_v29 = vadd.f32 %v4421_v28, %v4345_v25  ;;  %v4423_v30 = vpop.f32.mrb[39].mxu0 }
0x157c   : > { %v4424_v12 = vadd.f32 %v4423_v30, %v4349_v26 }
0x157d   : > { %v4426_v32 = vmax.f32 %v4422_v29, 0.0 }
0x157e   : > { %v4427_v31 = vmax.f32 %v4424_v12, 0.0 }
0x1580   : > { %4530 = vmatprep.mubr.f32.mxu1 %v4427_v31 }
0x1581   : > { %4531 = vmatmul.mubr.f32.vlgmr.msra.gmra.mrb[18].mxu1 %v4426_v32 }
0x1654   : > { %v4990_v33 = vpop.f32.mrb[18].mxu1 }
0x1655   : > { %v4991_v36 = vpop.f32.mrb[19].mxu1 }
0x1656   : > { %v4992_v37 = vadd.f32 %v4991_v36, %v4990_v33 }
0x1658   : > { %v4533_v38 = vadd.f32 %v4992_v37, %v4852_v34 }
0x165a   : > { %v4536_v39 = vadd.f32 %v4533_v38, %v4321_v6 }
0x165c   : > { %v4539_v13 = vsel %vm1218_vm5, %v4536_v39, 0.0 }
0x165d   : > { %4540 = vadd.xlane.f32.xlu0 %v4539_v13 }
0x16ea   : > { %v4541_v9 = vpop.xlane.xlu0 %4540 }
0x16eb   : > { %v4542_v40 = vmul.f32 0.015625, %v4541_v9 }
0x16ed   : > { %v4543_v41 = vsub.f32 %v4536_v39, %v4542_v40 }
0x16ef   : > { %v4544_v42 = vmul.f32 %v4543_v41, %v4543_v41 }
0x16f1   : > { %v4545_v43 = vsel %vm1218_vm5, %v4544_v42, 0.0 }
0x16f2   : > { %4546 = vadd.xlane.f32.xlu0 %v4545_v43 }
0x177f   : > { %v4547_v54 = vpop.xlane.xlu0 %4546 }
0x1780   : > { %v4548_v55 = vmul.f32 0.015625, %v4547_v54 }
0x1782   : > { %v4549_v56 = vadd.f32 1e-05, %v4548_v55 }
0x1784   : > { %5411 = vrsqrt.f32 %v4549_v56 }
0x178e   : > { %v5412_v57 = vpop.eup %5411 }
0x178f   : > { %v4551_v59 = vmul.f32 %v5412_v57, %v4543_v41 }
0x1791   : > { %v4556_v62 = vmul.f32 %v4853_v58, %v4551_v59 }
0x1793   : > { %v4561_v63 = vadd.f32 %v4854_v61, %v4556_v62 }
0x1795   : > { %v4572_v17 = vrot.slane %v4561_v63, 7 }
0x1797   : > { %5167 = vmatmul.mubr.msk.f32.vlgmr.msra.gmra.mrb[40].mxu0 %vm1218_vm5, %v4572_v17 }
0x186a   : > { %v4641_v0 = vpop.f32.mrb[40].mxu0 }
0x186b   : > { %v4642_v1 = vadd.f32 %v4641_v0, %v4570_v48  ;;  %v5168_v3 = vpop.f32.mrb[41].mxu0 }
0x186d   : > { %4645 = vst [vmem:[%s588_s19] sm:$0x1] %v4642_v1 }
0x186e PF: > { %s28_s27 = sadd.s32 1, %s5419_s27  }
0x186f   : > { %p25_p4 = scmp.ge.s32.totalorder %s28_s27, 4  }
0x1871   :  { %27 = sbr.rel (!%p25_p4) target bundleno = 4 (0x4), region = 131 }

</bundles_post_ra>
